<compile_context>
chip_gen: v7x
topology: tpu7x:2x2x1
jax: 0.10.0
libtpu: 0.0.40
codegen_flags: <defaults>
</compile_context>

<pallas_src>
import jax
import jax.numpy as jnp
from jax import lax
from jax.experimental import pallas as pl
from jax.experimental.pallas import tpu as pltpu  # noqa: F401  (TPU backend)

# ----------------------------- sizes (small) --------------------------------
B, S, H = 2, 8, 32          # batch, seq len, hidden (latent_size)
NH, HD = 4, 8               # attention heads, head dim
FF = 64                     # FFN intermediate
VOCAB = 64                  # vocab size (lm_head output)
IMG = 16                    # image spatial size
KH = KW = 7
STRIDE, PAD = 2, 3
OH = OW = (IMG + 2 * PAD - KH) // STRIDE + 1   # 8
CCONV = 16                  # conv1 output channels (reduced from 64)
LN_EPS = 1e-5
BS = B * S                  # 16
NPIX = B * OH * OW          # 128 conv output positions
KHW = KH * KW               # 49
KHWP = 56                   # 49 padded to a multiple of 8
LANES = 128
NEG = -1e9

# -------------------- lane-dense slab layouts (row, col, h, w) --------------
W_LAYOUT = {
    'word_emb': (0,   0,  VOCAB, H),
    'hm_rows':  (0,   32, NH * BS, H),
    'w2':       (0,   64, FF,    H),
    'wo':       (0,   96, H,     H),
    'hd_w':     (32,  96, H,     H),
    'wqkv':     (64,  0,  H,     3 * H),
    'fc_w':     (64,  96, CCONV, H),
    'pos':      (80,  96, BS,    H),
    'dec_w':    (96,  0,  H,     LANES),
    'w1':       (128, 0,  H,     FF),
    'conv_w':   (128, 64, KHWP,  CCONV),
    'ln_e_g':   (160, 0,  1, H), 'ln_e_b': (160, 32, 1, H),
    'ln1_g':    (161, 0,  1, H), 'ln1_b':  (161, 32, 1, H),
    'ln2_g':    (162, 0,  1, H), 'ln2_b':  (162, 32, 1, H),
    'hln_g':    (163, 0,  1, H), 'hln_b':  (163, 32, 1, H),
    'bo':       (164, 0,  1, H), 'b2':     (164, 32, 1, H),
    'hd_b':     (165, 0,  1, H), 'fc_b':   (165, 32, 1, H),
    'b1':       (166, 0,  1, FF),
    'selB':     (184, 0,  B, LANES),
    'bqkv':     (186, 0,  1, 3 * H),
    'dec_b':    (187, 0,  1, LANES),
}
W_ROWS = 188

D_LAYOUT = {
    'onehot': (0,  0, BS,   VOCAB),   # token one-hot
    'biasBS': (16, 0, BS,   BS),      # pad + cross-batch additive bias
    'sel':    (32, 0, B,    BS),      # [MASK]-row selector
    'im2col': (40, 0, NPIX, KHWP),    # conv1 patches
}
D_ROWS = 168


def _read(ref, layout, name):
    r, c, h, w = layout[name]
    return ref[r:r + h, c:c + w]


def _place(slab, layout, name, arr):
    r, c, h, w = layout[name]
    arr = jnp.asarray(arr, jnp.float32)
    assert arr.shape == (h, w), (name, arr.shape, (h, w))
    return slab.at[r:r + h, c:c + w].set(arr)


def _layer_norm(x, g, b):
    mu = jnp.mean(x, axis=-1, keepdims=True)
    var = jnp.mean((x - mu) ** 2, axis=-1, keepdims=True)
    return (x - mu) * lax.rsqrt(var + LN_EPS) * g + b


# --------------------------- the single fused kernel -------------------------
def fused_kernel(dyn_ref, wpk_ref, out_ref):
    f32 = jnp.float32
    W = lambda n: _read(wpk_ref, W_LAYOUT, n)      # noqa: E731
    D = lambda n: _read(dyn_ref, D_LAYOUT, n)      # noqa: E731

    # ---------------- embeddings: gather via one-hot matmul -----------------
    emb = jnp.dot(D('onehot'), W('word_emb'),
                  preferred_element_type=f32) + W('pos')            # [BS, H]
    x = _layer_norm(emb, W('ln_e_g'), W('ln_e_b'))

    # -------- self-attention: fused QKV, heads collapsed to 2-D matmuls -----
    qkv = jnp.dot(x, W('wqkv'), preferred_element_type=f32) + W('bqkv')
    q = qkv[:, 0:H]
    k = qkv[:, H:2 * H]
    v = qkv[:, 2 * H:3 * H]

    hm = W('hm_rows')                                # [NH*BS, H] head selector
    qt = jnp.concatenate([q] * NH, axis=0) * hm      # rows (head, b, sq)
    scores = jnp.einsum('qd,kd->qk', qt, k,
                        preferred_element_type=f32) * (HD ** -0.5)  # [64, 16]
    scores = scores + jnp.concatenate([D('biasBS')] * NH, axis=0)
    mmax = jnp.max(scores, axis=-1, keepdims=True)
    p_un = jnp.exp(scores - mmax)
    probs = p_un * pl.reciprocal(jnp.sum(p_un, axis=-1, keepdims=True),
                                 approx=True)
    ctx_rows = jnp.dot(probs, v, preferred_element_type=f32) * hm   # [64, H]
    ctx = (ctx_rows[0 * BS:1 * BS] + ctx_rows[1 * BS:2 * BS]
           + ctx_rows[2 * BS:3 * BS] + ctx_rows[3 * BS:4 * BS])     # [BS, H]

    attn = jnp.dot(ctx, W('wo'), preferred_element_type=f32) + W('bo')
    h1 = _layer_norm(x + attn, W('ln1_g'), W('ln1_b'))

    # TODO(synk): tanh-approx GELU (HF RoBERTa uses exact erf GELU)
    ff = jax.nn.gelu(jnp.dot(h1, W('w1'), preferred_element_type=f32)
                     + W('b1'), approximate=True)
    ff = jnp.dot(ff, W('w2'), preferred_element_type=f32) + W('b2')
    memory = _layer_norm(h1 + ff, W('ln2_g'), W('ln2_b'))           # [BS, H]

    # ----------- pick the [MASK] position per batch (selector matmul) -------
    memory_mask = jnp.dot(D('sel'), memory, preferred_element_type=f32)

    # -------- image branch: conv1 (im2col matmul) + relu + GAP + fc ---------
    # TODO(synk): BatchNorm between conv1 and relu omitted (no running stats).
    conv = jnp.maximum(
        jnp.dot(D('im2col'), W('conv_w'), preferred_element_type=f32), 0.0)
    pooled = jnp.dot(W('selB'), conv, preferred_element_type=f32)   # [B, C]
    memory_pic = jnp.dot(pooled, W('fc_w'),
                         preferred_element_type=f32) + W('fc_b')    # [B, H]

    # ----------------- combine_add + lm_head + softmax ----------------------
    z = memory_mask + memory_pic
    hh = jax.nn.gelu(jnp.dot(z, W('hd_w'), preferred_element_type=f32)
                     + W('hd_b'), approximate=True)
    hh = _layer_norm(hh, W('hln_g'), W('hln_b'))
    # decoder padded to 128 lanes (pad bias = -1e9) -> lane-dense stores,
    # softmax over the real 64 lanes is unchanged.
    logits = jnp.dot(hh, W('dec_w'),
                     preferred_element_type=f32) + W('dec_b')       # [B, 128]
    out_ref[...] = jax.nn.softmax(logits, axis=-1)


# ------------------------------ param handling -------------------------------
def make_params():
    key = jax.random.PRNGKey(42)
    ks = iter(jax.random.split(key, 32))

    def nrm(shape, scale=0.02):
        return (scale * jax.random.normal(next(ks), shape)).astype(jnp.float32)

    word_emb = nrm((VOCAB, H), 0.1)
    ones_h = jnp.ones((1, H), jnp.float32)
    zeros_h = jnp.zeros((1, H), jnp.float32)
    return dict(
        word_emb=word_emb,
        pos_emb=nrm((S, H), 0.02),
        ln_e_g=ones_h, ln_e_b=zeros_h,
        wq=nrm((H, H)), bq=nrm((1, H)),
        wk=nrm((H, H)), bk=nrm((1, H)),
        wv=nrm((H, H)), bv=nrm((1, H)),
        wo=nrm((H, H)), bo=nrm((1, H)),
        ln1_g=ones_h, ln1_b=zeros_h,
        w1=nrm((H, FF)), b1=nrm((1, FF)),
        w2=nrm((FF, H)), b2=nrm((1, H)),
        ln2_g=ones_h, ln2_b=zeros_h,
        hd_w=nrm((H, H)), hd_b=nrm((1, H)),          # lm_head.dense
        hln_g=ones_h, hln_b=zeros_h,                 # lm_head.layer_norm
        dec_w=word_emb.T, dec_b=nrm((1, VOCAB)),     # lm_head.decoder (tied)
        conv_w=nrm((KHW, CCONV), 0.05),              # conv1, rows = kh*KW+kw
        fc_w=jnp.zeros((CCONV, H), jnp.float32),     # nn.init.zeros_(fc.weight)
        fc_b=nrm((1, H)),
    )


def pack_params(P):
    """Pack every weight / constant into one lane-dense [W_ROWS, 128] slab."""
    f32 = jnp.float32
    hm_rows = ((jnp.arange(NH * BS)[:, None] // BS)
               == (jnp.arange(H)[None, :] // HD)).astype(f32)
    selB = ((jnp.arange(NPIX)[None, :] // (OH * OW))
            == jnp.arange(B)[:, None]).astype(f32) / float(OH * OW)
    entries = {
        'word_emb': P['word_emb'],
        'hm_rows': hm_rows,
        'w2': P['w2'],
        'wo': P['wo'],
        'hd_w': P['hd_w'],
        'wqkv': jnp.concatenate([P['wq'], P['wk'], P['wv']], axis=1),
        'fc_w': P['fc_w'],
        'pos': jnp.tile(P['pos_emb'], (B, 1)),
        'dec_w': jnp.pad(P['dec_w'], ((0, 0), (0, LANES - VOCAB))),
        'w1': P['w1'],
        'conv_w': jnp.pad(P['conv_w'], ((0, KHWP - KHW), (0, 0))),
        'ln_e_g': P['ln_e_g'], 'ln_e_b': P['ln_e_b'],
        'ln1_g': P['ln1_g'], 'ln1_b': P['ln1_b'],
        'ln2_g': P['ln2_g'], 'ln2_b': P['ln2_b'],
        'hln_g': P['hln_g'], 'hln_b': P['hln_b'],
        'bo': P['bo'], 'b2': P['b2'], 'hd_b': P['hd_b'], 'fc_b': P['fc_b'],
        'b1': P['b1'],
        'selB': selB,
        'bqkv': jnp.concatenate([P['bq'], P['bk'], P['bv']], axis=1),
        'dec_b': jnp.concatenate(
            [P['dec_b'], jnp.full((1, LANES - VOCAB), NEG, f32)], axis=1),
    }
    slab = jnp.zeros((W_ROWS, LANES), f32)
    for name, arr in entries.items():
        slab = _place(slab, W_LAYOUT, name, arr)
    return slab


# --------------------------------- wrapper -----------------------------------
@jax.jit
def model_lmp_forward(s_ids_mask, s_mask_pad, mask_index, mask_pic, wpk):
    """Wrapper does layout plumbing only (one-hot, selectors, bias, im2col)."""
    f32 = jnp.float32
    ids = s_ids_mask.reshape(BS).astype(jnp.int32)
    onehot = jax.nn.one_hot(ids, VOCAB, dtype=f32)                   # [16, 64]
    padf = s_mask_pad.astype(f32).reshape(BS)
    same_b = (jnp.arange(BS)[:, None] // S) == (jnp.arange(BS)[None, :] // S)
    biasBS = jnp.where(same_b & (padf[None, :] > 0.5), 0.0, NEG).astype(f32)
    target = (mask_index.reshape(B).astype(jnp.int32)
              + jnp.arange(B, dtype=jnp.int32) * S)
    sel = (jnp.arange(BS, dtype=jnp.int32)[None, :]
           == target[:, None]).astype(f32)                          # [2, 16]
    # im2col for the 7x7 / stride-2 / pad-3 conv1 (single input channel)
    img = mask_pic[:, 0].astype(f32)                                 # [B,16,16]
    xp = jnp.pad(img, ((0, 0), (PAD, PAD), (PAD, PAD)))
    cols = [xp[:, kh:kh + 2 * OH:2, kw:kw + 2 * OW:2]
            for kh in range(KH) for kw in range(KW)]
    im2col = jnp.stack(cols, axis=-1).reshape(NPIX, KHW)
    im2col = jnp.pad(im2col, ((0, 0), (0, KHWP - KHW)))              # [128, 56]

    dyn = jnp.zeros((D_ROWS, LANES), f32)
    dyn = _place(dyn, D_LAYOUT, 'onehot', onehot)
    dyn = _place(dyn, D_LAYOUT, 'biasBS', biasBS)
    dyn = _place(dyn, D_LAYOUT, 'sel', sel)
    dyn = _place(dyn, D_LAYOUT, 'im2col', im2col)

    out = pl.pallas_call(
        fused_kernel,
        out_shape=jax.ShapeDtypeStruct((B, LANES), f32),
    )(dyn, wpk)
    return out[:, :VOCAB]


# ----------------------- pure-JAX reference (validation) --------------------
def reference_forward(s_ids, s_pad, m_idx, pic, P):
    with jax.default_matmul_precision('highest'):
        emb = P['word_emb'][s_ids] + P['pos_emb'][None]
        x = _layer_norm(emb, P['ln_e_g'], P['ln_e_b'])
        q = x @ P['wq'] + P['bq']
        k = x @ P['wk'] + P['bk']
        v = x @ P['wv'] + P['bv']
        neg = (1.0 - s_pad) * NEG * -1.0 * -1.0  # == (1 - pad) * -1e9
        neg = (1.0 - s_pad) * NEG
        heads = []
        for h in range(NH):
            sl = slice(h * HD, (h + 1) * HD)
            s = jnp.einsum('bqd,bkd->bqk', q[..., sl], k[..., sl]) * HD ** -0.5
            p = jax.nn.softmax(s + neg[:, None, :], axis=-1)
            heads.append(jnp.einsum('bqk,bkd->bqd', p, v[..., sl]))
        ctx = jnp.concatenate(heads, axis=-1)
        attn = ctx @ P['wo'] + P['bo']
        h1 = _layer_norm(x + attn, P['ln1_g'], P['ln1_b'])
        ff = jax.nn.gelu(h1 @ P['w1'] + P['b1'], approximate=True) @ P['w2'] + P['b2']
        memory = _layer_norm(h1 + ff, P['ln2_g'], P['ln2_b'])
        memory_mask = jnp.take_along_axis(
            memory, m_idx[:, None, None], axis=1)[:, 0, :]

        xp = jnp.pad(pic[:, 0], ((0, 0), (PAD, PAD), (PAD, PAD)))
        conv = jnp.zeros((B, OH, OW, CCONV), jnp.float32)
        for kh in range(KH):
            for kw in range(KW):
                patch = xp[:, kh:kh + 2 * OH:2, kw:kw + 2 * OW:2]
                conv = conv + patch[..., None] * \
                    P['conv_w'][kh * KW + kw][None, None, None, :]
        pooled = jnp.mean(jnp.maximum(conv, 0.0), axis=(1, 2))
        memory_pic = pooled @ P['fc_w'] + P['fc_b']

        z = memory_mask + memory_pic
        hh = jax.nn.gelu(z @ P['hd_w'] + P['hd_b'], approximate=True)
        hh = _layer_norm(hh, P['hln_g'], P['hln_b'])
        logits = hh @ P['dec_w'] + P['dec_b']
        return jax.nn.softmax(logits, axis=-1)


if __name__ == "__main__":
    key = jax.random.PRNGKey(0)
    k1, k2, k3 = jax.random.split(key, 3)
    s_ids_mask = jax.random.randint(k1, (B, S), 0, VOCAB, dtype=jnp.int32)
    s_mask_pad = jnp.array([[1, 1, 1, 1, 1, 1, 1, 1],
                            [1, 1, 1, 1, 1, 1, 0, 0]], dtype=jnp.float32)
    mask_index = jnp.array([2, 3], dtype=jnp.int32)
    mask_pic = jax.random.normal(k2, (B, 1, IMG, IMG), dtype=jnp.float32)  # NCHW

    raw = make_params()
    wpk = pack_params(raw)
    out = model_lmp_forward(s_ids_mask, s_mask_pad, mask_index, mask_pic, wpk)
    out = jax.block_until_ready(out)

    assert out.shape == (B, VOCAB)
    assert bool(jnp.all(jnp.isfinite(out)))
    assert bool(jnp.allclose(jnp.sum(out, axis=-1), 1.0, atol=1e-5))

    # validate against the pure-JAX reference of the same stand-in model
    ref = reference_forward(s_ids_mask, s_mask_pad, mask_index, mask_pic, raw)
    assert bool(jnp.allclose(out, ref, atol=1e-3)), float(jnp.max(jnp.abs(out - ref)))

    # exercise the image branch with non-zero fc weights (the spec zero-inits
    # fc.weight, which would otherwise make the conv path output-invariant)
    raw_nz = dict(raw, fc_w=(0.02 * jax.random.normal(
        k3, (CCONV, H))).astype(jnp.float32))
    out_nz = model_lmp_forward(s_ids_mask, s_mask_pad, mask_index, mask_pic,
                               pack_params(raw_nz))
    out_nz = jax.block_until_ready(out_nz)
    ref_nz = reference_forward(s_ids_mask, s_mask_pad, mask_index, mask_pic,
                               raw_nz)
    assert bool(jnp.allclose(out_nz, ref_nz, atol=1e-3)), \
        float(jnp.max(jnp.abs(out_nz - ref_nz)))

    print("KERNEL_OK")
</pallas_src>

<mosaic_0001>
module attributes {stable_mosaic.version = 11 : i64} {
  func.func @fused_kernel(%arg0: memref<168x128xf32, #tpu.memory_space<vmem>>, %arg1: memref<188x128xf32, #tpu.memory_space<vmem>>, %arg2: memref<2x128xf32, #tpu.memory_space<vmem>>) attributes {dimension_semantics = [], scalar_prefetch = 0 : i64, scratch_operands = 0 : i64, tpu.core_type = #tpu.core_type<tc>} {
    %c0 = arith.constant 0 : index
    %c0_0 = arith.constant 0 : index
    %0 = vector.load %arg0[%c0, %c0_0] : memref<168x128xf32, #tpu.memory_space<vmem>>, vector<16x64xf32>
    %c0_1 = arith.constant 0 : index
    %c0_2 = arith.constant 0 : index
    %1 = vector.load %arg1[%c0_1, %c0_2] : memref<188x128xf32, #tpu.memory_space<vmem>>, vector<64x32xf32>
    %cst = arith.constant dense<0.000000e+00> : vector<16x32xf32>
    %2 = tpu.matmul %0, %1, %cst {dimension_numbers = #tpu.dot_dimension_numbers<[1], [0], [0], [1], [0, 0, 1, 1], [], []>} : vector<16x64xf32>, vector<64x32xf32>, vector<16x32xf32> -> vector<16x32xf32>
    %c80 = arith.constant 80 : index
    %c96 = arith.constant 96 : index
    %3 = vector.load %arg1[%c80, %c96] : memref<188x128xf32, #tpu.memory_space<vmem>>, vector<16x32xf32>
    %4 = arith.addf %2, %3 : vector<16x32xf32>
    %c160 = arith.constant 160 : index
    %c0_3 = arith.constant 0 : index
    %5 = vector.load %arg1[%c160, %c0_3] : memref<188x128xf32, #tpu.memory_space<vmem>>, vector<1x32xf32>
    %c160_4 = arith.constant 160 : index
    %c32 = arith.constant 32 : index
    %6 = vector.load %arg1[%c160_4, %c32] : memref<188x128xf32, #tpu.memory_space<vmem>>, vector<1x32xf32>
    %cst_5 = arith.constant dense<0.000000e+00> : vector<16xf32>
    %7 = vector.multi_reduction <add>, %4, %cst_5 [1] : vector<16x32xf32> to vector<16xf32>
    %8 = vector.shape_cast %7 : vector<16xf32> to vector<16x1xf32>
    %cst_6 = arith.constant 3.200000e+01 : f32
    %9 = vector.broadcast %cst_6 : f32 to vector<16x1xf32>
    %10 = arith.divf %8, %9 : vector<16x1xf32>
    %11 = vector.broadcast %10 : vector<16x1xf32> to vector<16x32xf32>
    %12 = arith.subf %4, %11 : vector<16x32xf32>
    %13 = arith.mulf %12, %12 : vector<16x32xf32>
    %cst_7 = arith.constant dense<0.000000e+00> : vector<16xf32>
    %14 = vector.multi_reduction <add>, %13, %cst_7 [1] : vector<16x32xf32> to vector<16xf32>
    %15 = vector.shape_cast %14 : vector<16xf32> to vector<16x1xf32>
    %cst_8 = arith.constant 3.200000e+01 : f32
    %16 = vector.broadcast %cst_8 : f32 to vector<16x1xf32>
    %17 = arith.divf %15, %16 : vector<16x1xf32>
    %18 = vector.broadcast %10 : vector<16x1xf32> to vector<16x32xf32>
    %19 = arith.subf %4, %18 : vector<16x32xf32>
    %cst_9 = arith.constant 9.99999974E-6 : f32
    %20 = vector.broadcast %cst_9 : f32 to vector<16x1xf32>
    %21 = arith.addf %17, %20 : vector<16x1xf32>
    %22 = math.rsqrt %21 : vector<16x1xf32>
    %23 = vector.broadcast %22 : vector<16x1xf32> to vector<16x32xf32>
    %24 = arith.mulf %19, %23 : vector<16x32xf32>
    %25 = vector.broadcast %5 : vector<1x32xf32> to vector<16x32xf32>
    %26 = arith.mulf %24, %25 : vector<16x32xf32>
    %27 = vector.broadcast %6 : vector<1x32xf32> to vector<16x32xf32>
    %28 = arith.addf %26, %27 : vector<16x32xf32>
    %c64 = arith.constant 64 : index
    %c0_10 = arith.constant 0 : index
    %29 = vector.load %arg1[%c64, %c0_10] : memref<188x128xf32, #tpu.memory_space<vmem>>, vector<32x96xf32>
    %cst_11 = arith.constant dense<0.000000e+00> : vector<16x96xf32>
    %30 = tpu.matmul %28, %29, %cst_11 {dimension_numbers = #tpu.dot_dimension_numbers<[1], [0], [0], [1], [0, 0, 1, 1], [], []>} : vector<16x32xf32>, vector<32x96xf32>, vector<16x96xf32> -> vector<16x96xf32>
    %c186 = arith.constant 186 : index
    %c0_12 = arith.constant 0 : index
    %31 = vector.load %arg1[%c186, %c0_12] : memref<188x128xf32, #tpu.memory_space<vmem>>, vector<1x96xf32>
    %32 = vector.broadcast %31 : vector<1x96xf32> to vector<16x96xf32>
    %33 = arith.addf %30, %32 : vector<16x96xf32>
    %34 = vector.extract_strided_slice %33 {offsets = [0, 0], sizes = [16, 32], strides = [1, 1]} : vector<16x96xf32> to vector<16x32xf32>
    %35 = vector.extract_strided_slice %33 {offsets = [0, 32], sizes = [16, 32], strides = [1, 1]} : vector<16x96xf32> to vector<16x32xf32>
    %36 = vector.extract_strided_slice %33 {offsets = [0, 64], sizes = [16, 32], strides = [1, 1]} : vector<16x96xf32> to vector<16x32xf32>
    %c0_13 = arith.constant 0 : index
    %c32_14 = arith.constant 32 : index
    %37 = vector.load %arg1[%c0_13, %c32_14] : memref<188x128xf32, #tpu.memory_space<vmem>>, vector<64x32xf32>
    %38 = tpu.concatenate %34, %34, %34, %34 in 0 : vector<16x32xf32>, vector<16x32xf32>, vector<16x32xf32>, vector<16x32xf32> -> vector<64x32xf32>
    %39 = arith.mulf %38, %37 : vector<64x32xf32>
    "tpu.trace_start"() <{level = 10 : i32, message = "qd,kd->qk"}> : () -> ()
    %cst_15 = arith.constant dense<0.000000e+00> : vector<64x16xf32>
    %40 = tpu.matmul %39, %35, %cst_15 {dimension_numbers = #tpu.dot_dimension_numbers<[1], [1], [0], [0], [0, 0, 1, 0], [], []>} : vector<64x32xf32>, vector<16x32xf32>, vector<64x16xf32> -> vector<64x16xf32>
    "tpu.trace_stop"() : () -> ()
    %cst_16 = arith.constant 0.353553385 : f32
    %41 = vector.broadcast %cst_16 : f32 to vector<64x16xf32>
    %42 = arith.mulf %40, %41 : vector<64x16xf32>
    %c16 = arith.constant 16 : index
    %c0_17 = arith.constant 0 : index
    %43 = vector.load %arg0[%c16, %c0_17] : memref<168x128xf32, #tpu.memory_space<vmem>>, vector<16x16xf32>
    %44 = tpu.concatenate %43, %43, %43, %43 in 0 : vector<16x16xf32>, vector<16x16xf32>, vector<16x16xf32>, vector<16x16xf32> -> vector<64x16xf32>
    %45 = arith.addf %42, %44 : vector<64x16xf32>
    %cst_18 = arith.constant dense<0xFF800000> : vector<64xf32>
    %46 = vector.multi_reduction <maximumf>, %45, %cst_18 [1] : vector<64x16xf32> to vector<64xf32>
    %47 = vector.shape_cast %46 : vector<64xf32> to vector<64x1xf32>
    %48 = vector.broadcast %47 : vector<64x1xf32> to vector<64x16xf32>
    %49 = arith.subf %45, %48 : vector<64x16xf32>
    %50 = math.exp %49 : vector<64x16xf32>
    %cst_19 = arith.constant dense<0.000000e+00> : vector<64xf32>
    %51 = vector.multi_reduction <add>, %50, %cst_19 [1] : vector<64x16xf32> to vector<64xf32>
    %52 = vector.shape_cast %51 : vector<64xf32> to vector<64x1xf32>
    %53 = tpu.reciprocal %52 {approx = true} : vector<64x1xf32> -> vector<64x1xf32>
    %54 = vector.broadcast %53 : vector<64x1xf32> to vector<64x16xf32>
    %55 = arith.mulf %50, %54 : vector<64x16xf32>
    %cst_20 = arith.constant dense<0.000000e+00> : vector<64x32xf32>
    %56 = tpu.matmul %55, %36, %cst_20 {dimension_numbers = #tpu.dot_dimension_numbers<[1], [0], [0], [1], [0, 0, 1, 1], [], []>} : vector<64x16xf32>, vector<16x32xf32>, vector<64x32xf32> -> vector<64x32xf32>
    %57 = arith.mulf %56, %37 : vector<64x32xf32>
    %58 = vector.extract_strided_slice %57 {offsets = [0, 0], sizes = [16, 32], strides = [1, 1]} : vector<64x32xf32> to vector<16x32xf32>
    %59 = vector.extract_strided_slice %57 {offsets = [16, 0], sizes = [16, 32], strides = [1, 1]} : vector<64x32xf32> to vector<16x32xf32>
    %60 = arith.addf %58, %59 : vector<16x32xf32>
    %61 = vector.extract_strided_slice %57 {offsets = [32, 0], sizes = [16, 32], strides = [1, 1]} : vector<64x32xf32> to vector<16x32xf32>
    %62 = arith.addf %60, %61 : vector<16x32xf32>
    %63 = vector.extract_strided_slice %57 {offsets = [48, 0], sizes = [16, 32], strides = [1, 1]} : vector<64x32xf32> to vector<16x32xf32>
    %64 = arith.addf %62, %63 : vector<16x32xf32>
    %c0_21 = arith.constant 0 : index
    %c96_22 = arith.constant 96 : index
    %65 = vector.load %arg1[%c0_21, %c96_22] : memref<188x128xf32, #tpu.memory_space<vmem>>, vector<32x32xf32>
    %cst_23 = arith.constant dense<0.000000e+00> : vector<16x32xf32>
    %66 = tpu.matmul %64, %65, %cst_23 {dimension_numbers = #tpu.dot_dimension_numbers<[1], [0], [0], [1], [0, 0, 1, 1], [], []>} : vector<16x32xf32>, vector<32x32xf32>, vector<16x32xf32> -> vector<16x32xf32>
    %c164 = arith.constant 164 : index
    %c0_24 = arith.constant 0 : index
    %67 = vector.load %arg1[%c164, %c0_24] : memref<188x128xf32, #tpu.memory_space<vmem>>, vector<1x32xf32>
    %68 = vector.broadcast %67 : vector<1x32xf32> to vector<16x32xf32>
    %69 = arith.addf %66, %68 : vector<16x32xf32>
    %70 = arith.addf %28, %69 : vector<16x32xf32>
    %c161 = arith.constant 161 : index
    %c0_25 = arith.constant 0 : index
    %71 = vector.load %arg1[%c161, %c0_25] : memref<188x128xf32, #tpu.memory_space<vmem>>, vector<1x32xf32>
    %c161_26 = arith.constant 161 : index
    %c32_27 = arith.constant 32 : index
    %72 = vector.load %arg1[%c161_26, %c32_27] : memref<188x128xf32, #tpu.memory_space<vmem>>, vector<1x32xf32>
    %cst_28 = arith.constant dense<0.000000e+00> : vector<16xf32>
    %73 = vector.multi_reduction <add>, %70, %cst_28 [1] : vector<16x32xf32> to vector<16xf32>
    %74 = vector.shape_cast %73 : vector<16xf32> to vector<16x1xf32>
    %cst_29 = arith.constant 3.200000e+01 : f32
    %75 = vector.broadcast %cst_29 : f32 to vector<16x1xf32>
    %76 = arith.divf %74, %75 : vector<16x1xf32>
    %77 = vector.broadcast %76 : vector<16x1xf32> to vector<16x32xf32>
    %78 = arith.subf %70, %77 : vector<16x32xf32>
    %79 = arith.mulf %78, %78 : vector<16x32xf32>
    %cst_30 = arith.constant dense<0.000000e+00> : vector<16xf32>
    %80 = vector.multi_reduction <add>, %79, %cst_30 [1] : vector<16x32xf32> to vector<16xf32>
    %81 = vector.shape_cast %80 : vector<16xf32> to vector<16x1xf32>
    %cst_31 = arith.constant 3.200000e+01 : f32
    %82 = vector.broadcast %cst_31 : f32 to vector<16x1xf32>
    %83 = arith.divf %81, %82 : vector<16x1xf32>
    %84 = vector.broadcast %76 : vector<16x1xf32> to vector<16x32xf32>
    %85 = arith.subf %70, %84 : vector<16x32xf32>
    %cst_32 = arith.constant 9.99999974E-6 : f32
    %86 = vector.broadcast %cst_32 : f32 to vector<16x1xf32>
    %87 = arith.addf %83, %86 : vector<16x1xf32>
    %88 = math.rsqrt %87 : vector<16x1xf32>
    %89 = vector.broadcast %88 : vector<16x1xf32> to vector<16x32xf32>
    %90 = arith.mulf %85, %89 : vector<16x32xf32>
    %91 = vector.broadcast %71 : vector<1x32xf32> to vector<16x32xf32>
    %92 = arith.mulf %90, %91 : vector<16x32xf32>
    %93 = vector.broadcast %72 : vector<1x32xf32> to vector<16x32xf32>
    %94 = arith.addf %92, %93 : vector<16x32xf32>
    %c128 = arith.constant 128 : index
    %c0_33 = arith.constant 0 : index
    %95 = vector.load %arg1[%c128, %c0_33] : memref<188x128xf32, #tpu.memory_space<vmem>>, vector<32x64xf32>
    %cst_34 = arith.constant dense<0.000000e+00> : vector<16x64xf32>
    %96 = tpu.matmul %94, %95, %cst_34 {dimension_numbers = #tpu.dot_dimension_numbers<[1], [0], [0], [1], [0, 0, 1, 1], [], []>} : vector<16x32xf32>, vector<32x64xf32>, vector<16x64xf32> -> vector<16x64xf32>
    %c166 = arith.constant 166 : index
    %c0_35 = arith.constant 0 : index
    %97 = vector.load %arg1[%c166, %c0_35] : memref<188x128xf32, #tpu.memory_space<vmem>>, vector<1x64xf32>
    %98 = vector.broadcast %97 : vector<1x64xf32> to vector<16x64xf32>
    %99 = arith.addf %96, %98 : vector<16x64xf32>
    %100 = arith.mulf %99, %99 : vector<16x64xf32>
    %101 = arith.mulf %99, %100 : vector<16x64xf32>
    %cst_36 = arith.constant 4.471500e-02 : f32
    %102 = vector.broadcast %cst_36 : f32 to vector<16x64xf32>
    %103 = arith.mulf %102, %101 : vector<16x64xf32>
    %104 = arith.addf %99, %103 : vector<16x64xf32>
    %cst_37 = arith.constant 0.797884583 : f32
    %105 = vector.broadcast %cst_37 : f32 to vector<16x64xf32>
    %106 = arith.mulf %105, %104 : vector<16x64xf32>
    %107 = math.tanh %106 : vector<16x64xf32>
    %cst_38 = arith.constant 1.000000e+00 : f32
    %108 = vector.broadcast %cst_38 : f32 to vector<16x64xf32>
    %109 = arith.addf %108, %107 : vector<16x64xf32>
    %cst_39 = arith.constant 5.000000e-01 : f32
    %110 = vector.broadcast %cst_39 : f32 to vector<16x64xf32>
    %111 = arith.mulf %110, %109 : vector<16x64xf32>
    %112 = arith.mulf %99, %111 : vector<16x64xf32>
    %c0_40 = arith.constant 0 : index
    %c64_41 = arith.constant 64 : index
    %113 = vector.load %arg1[%c0_40, %c64_41] : memref<188x128xf32, #tpu.memory_space<vmem>>, vector<64x32xf32>
    %cst_42 = arith.constant dense<0.000000e+00> : vector<16x32xf32>
    %114 = tpu.matmul %112, %113, %cst_42 {dimension_numbers = #tpu.dot_dimension_numbers<[1], [0], [0], [1], [0, 0, 1, 1], [], []>} : vector<16x64xf32>, vector<64x32xf32>, vector<16x32xf32> -> vector<16x32xf32>
    %c164_43 = arith.constant 164 : index
    %c32_44 = arith.constant 32 : index
    %115 = vector.load %arg1[%c164_43, %c32_44] : memref<188x128xf32, #tpu.memory_space<vmem>>, vector<1x32xf32>
    %116 = vector.broadcast %115 : vector<1x32xf32> to vector<16x32xf32>
    %117 = arith.addf %114, %116 : vector<16x32xf32>
    %118 = arith.addf %94, %117 : vector<16x32xf32>
    %c162 = arith.constant 162 : index
    %c0_45 = arith.constant 0 : index
    %119 = vector.load %arg1[%c162, %c0_45] : memref<188x128xf32, #tpu.memory_space<vmem>>, vector<1x32xf32>
    %c162_46 = arith.constant 162 : index
    %c32_47 = arith.constant 32 : index
    %120 = vector.load %arg1[%c162_46, %c32_47] : memref<188x128xf32, #tpu.memory_space<vmem>>, vector<1x32xf32>
    %cst_48 = arith.constant dense<0.000000e+00> : vector<16xf32>
    %121 = vector.multi_reduction <add>, %118, %cst_48 [1] : vector<16x32xf32> to vector<16xf32>
    %122 = vector.shape_cast %121 : vector<16xf32> to vector<16x1xf32>
    %cst_49 = arith.constant 3.200000e+01 : f32
    %123 = vector.broadcast %cst_49 : f32 to vector<16x1xf32>
    %124 = arith.divf %122, %123 : vector<16x1xf32>
    %125 = vector.broadcast %124 : vector<16x1xf32> to vector<16x32xf32>
    %126 = arith.subf %118, %125 : vector<16x32xf32>
    %127 = arith.mulf %126, %126 : vector<16x32xf32>
    %cst_50 = arith.constant dense<0.000000e+00> : vector<16xf32>
    %128 = vector.multi_reduction <add>, %127, %cst_50 [1] : vector<16x32xf32> to vector<16xf32>
    %129 = vector.shape_cast %128 : vector<16xf32> to vector<16x1xf32>
    %cst_51 = arith.constant 3.200000e+01 : f32
    %130 = vector.broadcast %cst_51 : f32 to vector<16x1xf32>
    %131 = arith.divf %129, %130 : vector<16x1xf32>
    %132 = vector.broadcast %124 : vector<16x1xf32> to vector<16x32xf32>
    %133 = arith.subf %118, %132 : vector<16x32xf32>
    %cst_52 = arith.constant 9.99999974E-6 : f32
    %134 = vector.broadcast %cst_52 : f32 to vector<16x1xf32>
    %135 = arith.addf %131, %134 : vector<16x1xf32>
    %136 = math.rsqrt %135 : vector<16x1xf32>
    %137 = vector.broadcast %136 : vector<16x1xf32> to vector<16x32xf32>
    %138 = arith.mulf %133, %137 : vector<16x32xf32>
    %139 = vector.broadcast %119 : vector<1x32xf32> to vector<16x32xf32>
    %140 = arith.mulf %138, %139 : vector<16x32xf32>
    %141 = vector.broadcast %120 : vector<1x32xf32> to vector<16x32xf32>
    %142 = arith.addf %140, %141 : vector<16x32xf32>
    %c32_53 = arith.constant 32 : index
    %c0_54 = arith.constant 0 : index
    %143 = vector.load %arg0[%c32_53, %c0_54] : memref<168x128xf32, #tpu.memory_space<vmem>>, vector<2x16xf32>
    %cst_55 = arith.constant dense<0.000000e+00> : vector<2x32xf32>
    %144 = tpu.matmul %143, %142, %cst_55 {dimension_numbers = #tpu.dot_dimension_numbers<[1], [0], [0], [1], [0, 0, 1, 1], [], []>} : vector<2x16xf32>, vector<16x32xf32>, vector<2x32xf32> -> vector<2x32xf32>
    %c40 = arith.constant 40 : index
    %c0_56 = arith.constant 0 : index
    %145 = vector.load %arg0[%c40, %c0_56] : memref<168x128xf32, #tpu.memory_space<vmem>>, vector<128x56xf32>
    %c128_57 = arith.constant 128 : index
    %c64_58 = arith.constant 64 : index
    %146 = vector.load %arg1[%c128_57, %c64_58] : memref<188x128xf32, #tpu.memory_space<vmem>>, vector<56x16xf32>
    %cst_59 = arith.constant dense<0.000000e+00> : vector<128x16xf32>
    %147 = tpu.matmul %145, %146, %cst_59 {dimension_numbers = #tpu.dot_dimension_numbers<[1], [0], [0], [1], [0, 0, 1, 1], [], []>} : vector<128x56xf32>, vector<56x16xf32>, vector<128x16xf32> -> vector<128x16xf32>
    %cst_60 = arith.constant 0.000000e+00 : f32
    %148 = vector.broadcast %cst_60 : f32 to vector<128x16xf32>
    %149 = arith.maximumf %147, %148 : vector<128x16xf32>
    %c184 = arith.constant 184 : index
    %c0_61 = arith.constant 0 : index
    %150 = vector.load %arg1[%c184, %c0_61] : memref<188x128xf32, #tpu.memory_space<vmem>>, vector<2x128xf32>
    %cst_62 = arith.constant dense<0.000000e+00> : vector<2x16xf32>
    %151 = tpu.matmul %150, %149, %cst_62 {dimension_numbers = #tpu.dot_dimension_numbers<[1], [0], [0], [1], [0, 0, 1, 1], [], []>} : vector<2x128xf32>, vector<128x16xf32>, vector<2x16xf32> -> vector<2x16xf32>
    %c64_63 = arith.constant 64 : index
    %c96_64 = arith.constant 96 : index
    %152 = vector.load %arg1[%c64_63, %c96_64] : memref<188x128xf32, #tpu.memory_space<vmem>>, vector<16x32xf32>
    %cst_65 = arith.constant dense<0.000000e+00> : vector<2x32xf32>
    %153 = tpu.matmul %151, %152, %cst_65 {dimension_numbers = #tpu.dot_dimension_numbers<[1], [0], [0], [1], [0, 0, 1, 1], [], []>} : vector<2x16xf32>, vector<16x32xf32>, vector<2x32xf32> -> vector<2x32xf32>
    %c165 = arith.constant 165 : index
    %c32_66 = arith.constant 32 : index
    %154 = vector.load %arg1[%c165, %c32_66] : memref<188x128xf32, #tpu.memory_space<vmem>>, vector<1x32xf32>
    %155 = vector.broadcast %154 : vector<1x32xf32> to vector<2x32xf32>
    %156 = arith.addf %153, %155 : vector<2x32xf32>
    %157 = arith.addf %144, %156 : vector<2x32xf32>
    %c32_67 = arith.constant 32 : index
    %c96_68 = arith.constant 96 : index
    %158 = vector.load %arg1[%c32_67, %c96_68] : memref<188x128xf32, #tpu.memory_space<vmem>>, vector<32x32xf32>
    %cst_69 = arith.constant dense<0.000000e+00> : vector<2x32xf32>
    %159 = tpu.matmul %157, %158, %cst_69 {dimension_numbers = #tpu.dot_dimension_numbers<[1], [0], [0], [1], [0, 0, 1, 1], [], []>} : vector<2x32xf32>, vector<32x32xf32>, vector<2x32xf32> -> vector<2x32xf32>
    %c165_70 = arith.constant 165 : index
    %c0_71 = arith.constant 0 : index
    %160 = vector.load %arg1[%c165_70, %c0_71] : memref<188x128xf32, #tpu.memory_space<vmem>>, vector<1x32xf32>
    %161 = vector.broadcast %160 : vector<1x32xf32> to vector<2x32xf32>
    %162 = arith.addf %159, %161 : vector<2x32xf32>
    %163 = arith.mulf %162, %162 : vector<2x32xf32>
    %164 = arith.mulf %162, %163 : vector<2x32xf32>
    %cst_72 = arith.constant 4.471500e-02 : f32
    %165 = vector.broadcast %cst_72 : f32 to vector<2x32xf32>
    %166 = arith.mulf %165, %164 : vector<2x32xf32>
    %167 = arith.addf %162, %166 : vector<2x32xf32>
    %cst_73 = arith.constant 0.797884583 : f32
    %168 = vector.broadcast %cst_73 : f32 to vector<2x32xf32>
    %169 = arith.mulf %168, %167 : vector<2x32xf32>
    %170 = math.tanh %169 : vector<2x32xf32>
    %cst_74 = arith.constant 1.000000e+00 : f32
    %171 = vector.broadcast %cst_74 : f32 to vector<2x32xf32>
    %172 = arith.addf %171, %170 : vector<2x32xf32>
    %cst_75 = arith.constant 5.000000e-01 : f32
    %173 = vector.broadcast %cst_75 : f32 to vector<2x32xf32>
    %174 = arith.mulf %173, %172 : vector<2x32xf32>
    %175 = arith.mulf %162, %174 : vector<2x32xf32>
    %c163 = arith.constant 163 : index
    %c0_76 = arith.constant 0 : index
    %176 = vector.load %arg1[%c163, %c0_76] : memref<188x128xf32, #tpu.memory_space<vmem>>, vector<1x32xf32>
    %c163_77 = arith.constant 163 : index
    %c32_78 = arith.constant 32 : index
    %177 = vector.load %arg1[%c163_77, %c32_78] : memref<188x128xf32, #tpu.memory_space<vmem>>, vector<1x32xf32>
    %cst_79 = arith.constant dense<0.000000e+00> : vector<2xf32>
    %178 = vector.multi_reduction <add>, %175, %cst_79 [1] : vector<2x32xf32> to vector<2xf32>
    %179 = vector.shape_cast %178 : vector<2xf32> to vector<2x1xf32>
    %cst_80 = arith.constant 3.200000e+01 : f32
    %180 = vector.broadcast %cst_80 : f32 to vector<2x1xf32>
    %181 = arith.divf %179, %180 : vector<2x1xf32>
    %182 = vector.broadcast %181 : vector<2x1xf32> to vector<2x32xf32>
    %183 = arith.subf %175, %182 : vector<2x32xf32>
    %184 = arith.mulf %183, %183 : vector<2x32xf32>
    %cst_81 = arith.constant dense<0.000000e+00> : vector<2xf32>
    %185 = vector.multi_reduction <add>, %184, %cst_81 [1] : vector<2x32xf32> to vector<2xf32>
    %186 = vector.shape_cast %185 : vector<2xf32> to vector<2x1xf32>
    %cst_82 = arith.constant 3.200000e+01 : f32
    %187 = vector.broadcast %cst_82 : f32 to vector<2x1xf32>
    %188 = arith.divf %186, %187 : vector<2x1xf32>
    %189 = vector.broadcast %181 : vector<2x1xf32> to vector<2x32xf32>
    %190 = arith.subf %175, %189 : vector<2x32xf32>
    %cst_83 = arith.constant 9.99999974E-6 : f32
    %191 = vector.broadcast %cst_83 : f32 to vector<2x1xf32>
    %192 = arith.addf %188, %191 : vector<2x1xf32>
    %193 = math.rsqrt %192 : vector<2x1xf32>
    %194 = vector.broadcast %193 : vector<2x1xf32> to vector<2x32xf32>
    %195 = arith.mulf %190, %194 : vector<2x32xf32>
    %196 = vector.broadcast %176 : vector<1x32xf32> to vector<2x32xf32>
    %197 = arith.mulf %195, %196 : vector<2x32xf32>
    %198 = vector.broadcast %177 : vector<1x32xf32> to vector<2x32xf32>
    %199 = arith.addf %197, %198 : vector<2x32xf32>
    %c96_84 = arith.constant 96 : index
    %c0_85 = arith.constant 0 : index
    %200 = vector.load %arg1[%c96_84, %c0_85] : memref<188x128xf32, #tpu.memory_space<vmem>>, vector<32x128xf32>
    %cst_86 = arith.constant dense<0.000000e+00> : vector<2x128xf32>
    %201 = tpu.matmul %199, %200, %cst_86 {dimension_numbers = #tpu.dot_dimension_numbers<[1], [0], [0], [1], [0, 0, 1, 1], [], []>} : vector<2x32xf32>, vector<32x128xf32>, vector<2x128xf32> -> vector<2x128xf32>
    %c187 = arith.constant 187 : index
    %c0_87 = arith.constant 0 : index
    %202 = vector.load %arg1[%c187, %c0_87] : memref<188x128xf32, #tpu.memory_space<vmem>>, vector<1x128xf32>
    %203 = vector.broadcast %202 : vector<1x128xf32> to vector<2x128xf32>
    %204 = arith.addf %201, %203 : vector<2x128xf32>
    %cst_88 = arith.constant dense<0xFF800000> : vector<2xf32>
    %205 = vector.multi_reduction <maximumf>, %204, %cst_88 [1] : vector<2x128xf32> to vector<2xf32>
    %cst_89 = arith.constant 0xFF800000 : f32
    %206 = vector.broadcast %cst_89 : f32 to vector<2xf32>
    %207 = arith.maximumf %206, %205 : vector<2xf32>
    %208 = vector.shape_cast %207 : vector<2xf32> to vector<2x1xf32>
    %209 = vector.broadcast %208 : vector<2x1xf32> to vector<2x128xf32>
    %210 = arith.subf %204, %209 : vector<2x128xf32>
    %211 = math.exp %210 : vector<2x128xf32>
    %cst_90 = arith.constant dense<0.000000e+00> : vector<2xf32>
    %212 = vector.multi_reduction <add>, %211, %cst_90 [1] : vector<2x128xf32> to vector<2xf32>
    %213 = vector.shape_cast %212 : vector<2xf32> to vector<2x1xf32>
    %214 = vector.broadcast %213 : vector<2x1xf32> to vector<2x128xf32>
    %215 = arith.divf %211, %214 : vector<2x128xf32>
    %c0_91 = arith.constant 0 : index
    %c0_92 = arith.constant 0 : index
    %216 = vector.load %arg2[%c0_91, %c0_92] : memref<2x128xf32, #tpu.memory_space<vmem>>, vector<2x128xf32>
    tpu.vector_store %arg2[%c0_91, %c0_92], %215 {strides = array<i32>} : memref<2x128xf32, #tpu.memory_space<vmem>>, vector<2x128xf32>,
    return
  }
}

</mosaic_0001>

<bundles_post_ra>
// kernel: eq.1
= control target key start
LH: loop header
LB: loop body
LE: loop exit
PB: predicated region body
PF: predicated region fallthrough
CT: control target
= control target key end

     0   :  { %vm7_vm0 = vcmask 64512   ;;  %vm13_vm1 = vcmask 130112   ;;  %s39_s0 = inlined_call_operand.vmem [shape: s32[2,8], index: 0, kind: input, shape index: {}]   ;;  %s40_s1 = inlined_call_operand.vmem [shape: s32[16], index: 1, kind: output, shape index: {}]  }
   0x1   :  { %v4_v0 = vld [vmem:[%s39_s0] sm:$0x3]  ;;  %s22_s0 = smov 8  }
   0x2   :  { %5 = vst [vmem:[#allocation1] sm:$0x3] %v4_v0 }
   0x9   :  { %v10_v1 = vld [vmem:[#allocation1 + $0x1] sm:$0x1]   ;;  %v6_v2 = vld [vmem:[#allocation1] sm:$0x1]  }
   0xa   :  { %11 = vrot.lane.b32.xlu0 %v10_v1, %s22_s0  ;;  %8 = vst.msk [vmem:[#allocation0] sm:$0x1] %vm7_vm0, %v6_v2  }
  0x7c   :  { %v12_v3 = vpop.permute.xlu0 %11  }
  0x7d   :  { %14 = vst.msk [vmem:[#allocation0] sm:$0x1] %vm13_vm1, %v12_v3  }
  0x84   :  { %v18_v4 = vld [vmem:[#allocation0] sm:$0x1] }
  0x85   :  { %20 = vst [vmem:[%s40_s1] sm:$0x1] %v18_v4 }

// kernel: model_lmp_forward.1
= control target key start
LH: loop header
LB: loop body
LE: loop exit
PB: predicated region body
PF: predicated region fallthrough
CT: control target
= control target key end

     0   :  { %vm32_vm0 = vcmask 523264   ;;  %s2489_s27 = smov 32   ;;  %s2934_s0 = inlined_call_operand.vmem [shape: f32[168,128], index: 0, kind: input, shape index: {}]   ;;  %s2935_s1 = inlined_call_operand.vmem [shape: f32[188,128], index: 1, kind: input, shape index: {}]   ;;  %s2936_s2 = inlined_call_operand.hbm [shape: f32[2,128], index: 2, kind: output, shape index: {}]  }
   0x1   :  { %v2514_v0 = vld [vmem:[%s2935_s1] sm:$0xff]  ;;  %v2519_v1 = vld [vmem:[%s2935_s1 + $0x8] sm:$0xff]  ;;  %v2524_v2 = vld [vmem:[%s2935_s1 + $0x10] sm:$0xff] }
   0x2   :  { %v2208_v3 = vpack.c.bf16 %v2519_v1, %v2514_v0  ;;  %v2531_v4 = vld [vmem:[%s2935_s1 + $0x18] sm:$0xff]  ;;  %v2538_v6 = vld [vmem:[%s2935_s1 + $0x20] sm:$0xff]  ;;  %v2543_v7 = vld [vmem:[%s2935_s1 + $0x28] sm:$0xff] }
   0x3   :  { %v2212_v5 = vpack.c.bf16 %v2531_v4, %v2524_v2  ;;  %v12_v8 = vld [vmem:[%s2934_s0] sm:$0xff]  ;;  %v22_v9 = vld [vmem:[%s2935_s1 + $0x50] sm:$0xff]  ;;  %v23_v10 = vld [vmem:[%s2935_s1 + $0x58] sm:$0xff] }
   0x4   :  { %2209 = vmatprep.subr.bf16.mxu0 %v2208_v3  ;;  %2012 = vmatprep.mubr.msk.f32.mxu0 %vm32_vm0, %v12_v8  ;;  %v2228_v11 = vpack.c.bf16 %v23_v10, %v22_v9 }
   0x5   :  { %2211 = vmatpush3.bf16.msra.mxu0 %v2208_v3  ;;  %26 = vrot.lane.b32.xlu0 %v22_v9, %s2489_s27 }
   0x6   :  { %7 = vsyncpa [#allocation3], 0  ;;  %2213 = vmatprep.subr.bf16.mxu0 %v2212_v5  ;;  %v2216_v12 = vpack.c.bf16 %v2543_v7, %v2538_v6  ;;  %v2561_v13 = vld [vmem:[%s2935_s1 + $0x30] sm:$0xff]  ;;  %v2566_v14 = vld [vmem:[%s2935_s1 + $0x38] sm:$0xff]  ;;  %vm115_vm1 = vcmask 261120   ;;  %s2490_s8 = smov 96  }
   0x7   :  { %v2220_v15 = vpack.c.bf16 %v2566_v14, %v2561_v13  ;;  %v13_v16 = vld [vmem:[%s2934_s0 + $0x8] sm:$0xff]  ;;  %v1827_v35 = vld [vmem:[%s2935_s1 + $0xa0] ss:$0 sm:$0xff]  ;;  %v1828_v54 = vld [vmem:[%s2935_s1 + $0xba] ss:$0 sm:$0xff]  ;;  %vm440_vm3 = vcmask 130048  }
   0x8   :  { %v155_v36 = vld [vmem:[%s2935_s1 + $0x40] sm:$0xff]  ;;  %v156_v37 = vld [vmem:[%s2935_s1 + $0x48] sm:$0xff]  ;;  %vm2233_vm2 = vmpackc.low %vm115_vm1, %vm115_vm1  ;;  %s2491_s19 = smov 64   ;;  %vm1151_vm4 = vcmask 457728   ;;  %vm2493_vm5 = vmmov 0   ;;  %vm1692_vm6 = vcmask 254976  }
   0x9   :  { %2215 = vmatpush3.bf16.msra.mxu0 %v2212_v5  ;;  %28 = vrot.lane.b32.xlu0 %v23_v10, %s2489_s27  ;;  %v2224_v38 = vpack.c.bf16 %v156_v37, %v155_v36  ;;  %vm1798_vm7 = vcmask 1041408   ;;  %s2495_s15 = smov [#allocation2]  }
   0xa   :  { %2217 = vmatprep.subr.bf16.mxu0 %v2216_v12  ;;  %s1817_s16 = sshll.u32 %s2495_s15, 4  ;;  %s1818_s16 = int_to_ptr.vmem [resolvable:$true] %s1817_s16 }
   0xb   :  { %2225 = vmatprep.subr.bf16.mxu1 %v2224_v38  ;;  %p2470_p1 = scmp.lt.s32.totalorder %s1818_s16, %s1818_s16 }
   0xc   :  { %2227 = vmatpush3.bf16.msra.mxu1 %v2224_v38 }
   0xd   :  { %2219 = vmatpush3.bf16.msra.mxu0 %v2216_v12  ;;  %2229 = vmatprep.subr.bf16.mxu1 %v2228_v11 }
   0xe   :  { %2221 = vmatprep.subr.bf16.mxu0 %v2220_v15 }
  0x10   :  { %2231 = vmatpush3.bf16.msra.mxu1 %v2228_v11 }
  0x11   :  { %2223 = vmatpush3.bf16.msra.mxu0 %v2220_v15 }
  0x14   :  { %2013 = vmatmul.mubr.msk.f32.vlgmr.msra.gmra.mrb[0].mxu0 %vm32_vm0, %v13_v16 }
  0x77   :  { %v27_v17 = vpop.permute.xlu0 %26 }
  0x7b   :  { %v29_v19 = vpop.permute.xlu0 %28 }
  0xe7   :  { %v2014_v18 = vpop.f32.mrb[0].mxu0 }
  0xe8   :  { %v105_v20 = vpop.f32.mrb[1].mxu0  ;;  %v111_v22 = vadd.f32 %v2014_v18, %v29_v19 }
  0xe9   :  { %v106_v21 = vadd.f32 %v105_v20, %v27_v17 }
  0xea   :  { %v119_v24 = vsel %vm115_vm1, %v111_v22, 0.0 }
  0xeb   :  { %v116_v23 = vsel %vm115_vm1, %v106_v21, 0.0 }
  0xec   :  { %117 = vadd.xlane.f32.xlu1 %v116_v23 }
  0xf0   :  { %120 = vadd.xlane.f32.xlu1 %v119_v24 }
 0x179   :  { %v118_v25 = vpop.xlane.xlu1 %117 }
 0x17a   :  { %v123_v26 = vmul.f32 0.03125, %v118_v25  ;;  %v431_v25 = vld [vmem:[%s2934_s0 + $0x18] sm:$0xff] }
 0x17c   :  { %v125_v27 = vsub.f32 %v106_v21, %v123_v26 }
 0x17d   :  { %v121_v28 = vpop.xlane.xlu1 %120 }
 0x17e   :  { %v124_v29 = vmul.f32 0.03125, %v121_v28  ;;  %v127_v30 = vmul.f32 %v125_v27, %v125_v27  ;;  %v430_v28 = vld [vmem:[%s2934_s0 + $0x10] sm:$0xff] }
 0x180   :  { %v126_v31 = vsub.f32 %v111_v22, %v124_v29  ;;  %v129_v32 = vsel %vm115_vm1, %v127_v30, 0.0 }
 0x181   :  { %130 = vadd.xlane.f32.xlu0 %v129_v32 }
 0x182   :  { %v128_v33 = vmul.f32 %v126_v31, %v126_v31 }
 0x184   :  { %v132_v34 = vsel %vm115_vm1, %v128_v33, 0.0 }
 0x185   :  { %133 = vadd.xlane.f32.xlu1 %v132_v34 }
 0x196   :  { %150 = vrot.lane.b32.xlu1 %v1827_v35, %s2490_s8 }
 0x197   :  { %255 = vrot.lane.b32.xlu0 %v2524_v2, %s2490_s8 }
 0x19a   :  { %251 = vrot.lane.b32.xlu1 %v2514_v0, %s2490_s8 }
 0x19e   :  { %253 = vrot.lane.b32.xlu1 %v2519_v1, %s2490_s8 }
 0x20e   :  { %v131_v39 = vpop.xlane.xlu0 %130 }
 0x20f   :  { %v135_v40 = vmul.f32 0.03125, %v131_v39 }
 0x211   :  { %v137_v41 = vadd.f32 1e-05, %v135_v40 }
 0x212   :  { %v134_v42 = vpop.xlane.xlu1 %133  ;;  %v2632_v11 = vpop.permute.xlu0 %255 }
 0x213   :  { %2407 = vrsqrt.f32 %v137_v41  ;;  %v136_v43 = vmul.f32 0.03125, %v134_v42 }
 0x215   :  { %v138_v44 = vadd.f32 1e-05, %v136_v43 }
 0x216   :  { %v151_v47 = vpop.permute.xlu1 %150 }
 0x217   :  { %2409 = vrsqrt.f32 %v138_v44 }
 0x21a   :  { %v2606_v59 = vpop.permute.xlu1 %251 }
 0x21d   :  { %v2408_v45 = vpop.eup %2407 }
 0x21e   :  { %v141_v46 = vmul.f32 %v2408_v45, %v125_v27  ;;  %v2624_v62 = vpop.permute.xlu1 %253 }
 0x220   :  { %v147_v48 = vmul.f32 %v1827_v35, %v141_v46 }
 0x221   :  { %v2410_v49 = vpop.eup %2409 }
 0x222   :  { %v142_v50 = vmul.f32 %v2410_v49, %v126_v31  ;;  %v2595_v51 = vadd.f32 %v151_v47, %v147_v48 }
 0x224   :  { %v148_v52 = vmul.f32 %v1827_v35, %v142_v50  ;;  %2023 = vmatprep.mubr.msk.f32.mxu1 %vm115_vm1, %v2595_v51 }
 0x226   :  { %v2599_v53 = vadd.f32 %v151_v47, %v148_v52 }
 0x228   :  { %2024 = vmatmul.mubr.msk.f32.vlgmr.msra.gmra.mrb[0].mxu1 %vm115_vm1, %v2599_v53 }
 0x2fb   :  { %v2025_v55 = vpop.f32.mrb[0].mxu1 }
 0x2fc   :  { %v240_v56 = vadd.f32 %v2025_v55, %v1828_v54  ;;  %v234_v57 = vpop.f32.mrb[1].mxu1 }
 0x2fd   :  { %v235_v58 = vadd.f32 %v1828_v54, %v234_v57 }
 0x2fe   :  { %v276_v12 = vmul.f32 %v2624_v62, %v240_v56 }
 0x2ff   :  { %v2608_v60 = vpack.i.bf16 %v240_v56, %v235_v58  ;;  %v275_v61 = vmul.f32 %v2606_v59, %v235_v58  ;;  %v277_v15 = vmul.f32 %v2632_v11, %v235_v58 }
 0x301   :  { %2338 = vrot.lane.b32.xlu1 %v2608_v60, %s2490_s8  ;;  %2030 = vmatprep.mubr.msk.f32.mxu1 %vm115_vm1, %v275_v61 }
 0x305   :  { %257 = vrot.lane.b32.xlu1 %v2531_v4, %s2490_s8 }
 0x309   :  { %259 = vrot.lane.b32.xlu1 %v2538_v6, %s2490_s8 }
 0x30d   :  { %261 = vrot.lane.b32.xlu1 %v2543_v7, %s2490_s8 }
 0x311   :  { %263 = vrot.lane.b32.xlu1 %v2561_v13, %s2490_s8 }
 0x315   :  { %265 = vrot.lane.b32.xlu1 %v2566_v14, %s2490_s8 }
 0x373   :  { %v2339_v63 = vpop.permute.xlu1 %2338 }
 0x374   :  { %v2341_v3 = vunpack.i.h.bf16 %v2339_v63  ;;  %v2340_v5 = vunpack.i.l.bf16 %v2339_v63 }
 0x376   :  { %v2232_v8 = vpack.c.bf16 %v2341_v3, %v2340_v5 }
 0x377   :  { %v2628_v9 = vpop.permute.xlu1 %257 }
 0x378   :  { %2234 = vmatprep.subr.msk.bf16.mxu1 %vm2233_vm2, %v2232_v8  ;;  %v278_v17 = vmul.f32 %v2628_v9, %v240_v56 }
 0x379   :  { %2237 = vmatpush3.bf16.xpose.msk.msra.mxu1 %vm2233_vm2, %v2232_v8 }
 0x37b   :  { %v2630_v10 = vpop.permute.xlu1 %259 }
 0x37c   :  { %v279_v18 = vmul.f32 %v2630_v10, %v235_v58 }
 0x37f   :  { %v2636_v16 = vpop.permute.xlu1 %261 }
 0x380   :  { %2031 = vmatmul.mubr.msk.f32.vlgmr.msra.gmra.mrb[2].mxu1 %vm115_vm1, %v276_v12  ;;  %v280_v20 = vmul.f32 %v2636_v16, %v240_v56 }
 0x381   :  { %2033 = vmatprep.mubr.msk.f32.mxu1 %vm115_vm1, %v277_v15 }
 0x383   :  { %v2642_v19 = vpop.permute.xlu1 %263 }
 0x384   :  { %2034 = vmatmul.mubr.msk.f32.gmra.mrb[4].mxu1 %vm115_vm1, %v278_v17  ;;  %v281_v21 = vmul.f32 %v2642_v19, %v235_v58 }
 0x385   :  { %2036 = vmatprep.mubr.msk.f32.mxu1 %vm115_vm1, %v279_v18 }
 0x387   :  { %v2648_v22 = vpop.permute.xlu1 %265 }
 0x388   :  { %2037 = vmatmul.mubr.msk.f32.gmra.mrb[6].mxu1 %vm115_vm1, %v280_v20  ;;  %v282_v23 = vmul.f32 %v2648_v22, %v240_v56 }
 0x389   :  { %2039 = vmatprep.mubr.msk.f32.mxu1 %vm115_vm1, %v281_v21 }
 0x38c   :  { %2040 = vmatmul.mubr.msk.f32.gmra.mrb[8].mxu1 %vm115_vm1, %v282_v23 }
 0x453   :  { %v2032_v24 = vpop.f32.mrb[2].mxu1 }
 0x454   :  { %v423_v26 = vmul.f32 0.35355338, %v2032_v24  ;;  %v383_v27 = vpop.f32.mrb[3].mxu1 }
 0x455   :  { %v422_v29 = vmul.f32 0.35355338, %v383_v27 }
 0x456   :  { %v433_v30 = vadd.f32 %v431_v25, %v423_v26 }
 0x457   :  { %v2035_v31 = vpop.f32.mrb[4].mxu1  ;;  %v432_v32 = vadd.f32 %v430_v28, %v422_v29 }
 0x458   :  { %v425_v33 = vmul.f32 0.35355338, %v2035_v31  ;;  %v393_v34 = vpop.f32.mrb[5].mxu1  ;;  %v444_v35 = vsel %vm440_vm3, %v433_v30, -inf }
 0x459   :  { %v424_v36 = vmul.f32 0.35355338, %v393_v34  ;;  %445 = vmax.xlane.f32.xlu1 %v444_v35  ;;  %v441_v37 = vsel %vm440_vm3, %v432_v32, -inf }
 0x45a   :  { %442 = vmax.xlane.f32.xlu0 %v441_v37  ;;  %v435_v41 = vadd.f32 %v431_v25, %v425_v33 }
 0x45b   :  { %v2038_v38 = vpop.f32.mrb[6].mxu1  ;;  %v434_v39 = vadd.f32 %v430_v28, %v424_v36 }
 0x45c   :  { %v403_v40 = vpop.f32.mrb[7].mxu1  ;;  %v427_v42 = vmul.f32 0.35355338, %v2038_v38  ;;  %v450_v48 = vsel %vm440_vm3, %v435_v41, -inf }
 0x45d   :  { %v426_v43 = vmul.f32 0.35355338, %v403_v40  ;;  %v447_v44 = vsel %vm440_vm3, %v434_v39, -inf }
 0x45e   :  { %448 = vmax.xlane.f32.xlu0 %v447_v44  ;;  %v437_v54 = vadd.f32 %v431_v25, %v427_v42 }
 0x45f   :  { %v2041_v45 = vpop.f32.mrb[8].mxu1  ;;  %v436_v46 = vadd.f32 %v430_v28, %v426_v43 }
 0x460   :  { %v413_v47 = vpop.f32.mrb[9].mxu1  ;;  %v429_v49 = vmul.f32 0.35355338, %v2041_v45  ;;  %v456_v56 = vsel %vm440_vm3, %v437_v54, -inf }
 0x461   :  { %v428_v50 = vmul.f32 0.35355338, %v413_v47  ;;  %v453_v52 = vsel %vm440_vm3, %v436_v46, -inf }
 0x462   :  { %451 = vmax.xlane.f32.xlu0 %v450_v48  ;;  %454 = vmax.xlane.f32.xlu1 %v453_v52  ;;  %v439_v58 = vadd.f32 %v431_v25, %v429_v49 }
 0x463   :  { %v438_v55 = vadd.f32 %v430_v28, %v428_v50 }
 0x464   :  { %v462_v61 = vsel %vm440_vm3, %v439_v58, -inf }
 0x465   :  { %v459_v57 = vsel %vm440_vm3, %v438_v55, -inf }
 0x466   :  { %457 = vmax.xlane.f32.xlu0 %v456_v56  ;;  %460 = vmax.xlane.f32.xlu1 %v459_v57  ;;  %v2687_v56 = vpack.i.bf16 %v2531_v4, %v2524_v2 }
 0x46a   :  { %463 = vmax.xlane.f32.xlu0 %v462_v61 }
 0x4e6   :  { %v446_v63 = vpop.xlane.xlu1 %445 }
 0x4e7   :  { %v466_v3 = vsub.f32 %v433_v30, %v446_v63  ;;  %v443_v5 = vpop.xlane.xlu0 %442 }
 0x4e8   :  { %v465_v8 = vsub.f32 %v432_v32, %v443_v5 }
 0x4e9   :  { %v475_v12 = vmul.f32 1.442695, %v466_v3 }
 0x4ea   :  { %v473_v15 = vmul.f32 1.442695, %v465_v8 }
 0x4eb   :  { %2411 = vpow2.f32 %v475_v12  ;;  %v449_v17 = vpop.xlane.xlu0 %448 }
 0x4ec   :  { %2413 = vpow2.f32 %v473_v15  ;;  %v467_v18 = vsub.f32 %v434_v39, %v449_v17 }
 0x4ee   :  { %v477_v20 = vmul.f32 1.442695, %v467_v18 }
 0x4ef   :  { %v452_v21 = vpop.xlane.xlu0 %451  ;;  %v455_v23 = vpop.xlane.xlu1 %454 }
 0x4f0   :  { %2415 = vpow2.f32 %v477_v20  ;;  %v468_v24 = vsub.f32 %v435_v41, %v452_v21  ;;  %v469_v25 = vsub.f32 %v436_v46, %v455_v23 }
 0x4f2   :  { %v479_v26 = vmul.f32 1.442695, %v468_v24  ;;  %v481_v27 = vmul.f32 1.442695, %v469_v25 }
 0x4f3   :  { %v458_v28 = vpop.xlane.xlu0 %457  ;;  %v461_v29 = vpop.xlane.xlu1 %460 }
 0x4f4   :  { %2417 = vpow2.f32 %v479_v26  ;;  %v470_v30 = vsub.f32 %v437_v54, %v458_v28  ;;  %v471_v31 = vsub.f32 %v438_v55, %v461_v29  ;;  %v2683_v55 = vpack.i.bf16 %v2519_v1, %v2514_v0 }
 0x4f5   :  { %v2668_v32 = vpop.eup %2411  ;;  %2419 = vpow2.f32 %v481_v27 }
 0x4f6   :  { %v2414_v33 = vpop.eup %2413  ;;  %v483_v34 = vmul.f32 1.442695, %v470_v30  ;;  %v485_v35 = vmul.f32 1.442695, %v471_v31  ;;  %v492_v36 = vsel %vm440_vm3, %v2668_v32, 0.0 }
 0x4f7   :  { %493 = vadd.xlane.f32.xlu0 %v492_v36  ;;  %v464_v37 = vpop.xlane.xlu0 %463  ;;  %v489_v38 = vsel %vm440_vm3, %v2414_v33, 0.0 }
 0x4f8   :  { %2421 = vpow2.f32 %v483_v34  ;;  %v472_v39 = vsub.f32 %v439_v58, %v464_v37  ;;  %490 = vadd.xlane.f32.xlu1 %v489_v38 }
 0x4f9   :  { %2423 = vpow2.f32 %v485_v35 }
 0x4fa   :  { %v2416_v40 = vpop.eup %2415  ;;  %v487_v41 = vmul.f32 1.442695, %v472_v39 }
 0x4fb   :  { %v495_v42 = vsel %vm440_vm3, %v2416_v40, 0.0 }
 0x4fc   :  { %2425 = vpow2.f32 %v487_v41  ;;  %496 = vadd.xlane.f32.xlu1 %v495_v42 }
 0x4fe   :  { %v2418_v43 = vpop.eup %2417 }
 0x4ff   :  { %v2420_v44 = vpop.eup %2419  ;;  %v498_v45 = vsel %vm440_vm3, %v2418_v43, 0.0 }
 0x500   :  { %499 = vadd.xlane.f32.xlu0 %v498_v45  ;;  %v501_v46 = vsel %vm440_vm3, %v2420_v44, 0.0 }
 0x501   :  { %502 = vadd.xlane.f32.xlu1 %v501_v46 }
 0x502   :  { %v2422_v47 = vpop.eup %2421 }
 0x503   :  { %v2424_v48 = vpop.eup %2423  ;;  %v504_v49 = vsel %vm440_vm3, %v2422_v47, 0.0 }
 0x504   :  { %505 = vadd.xlane.f32.xlu0 %v504_v49  ;;  %v507_v50 = vsel %vm440_vm3, %v2424_v48, 0.0 }
 0x505   :  { %508 = vadd.xlane.f32.xlu1 %v507_v50 }
 0x506   :  { %v2426_v52 = vpop.eup %2425 }
 0x507   :  { %v510_v54 = vsel %vm440_vm3, %v2426_v52, 0.0 }
 0x508   :  { %511 = vadd.xlane.f32.xlu0 %v510_v54 }
 0x516   :  { %2343 = vrot.lane.b32.xlu1 %v2608_v60, %s2491_s19 }
 0x51a   :  { %2353 = vrot.lane.b32.xlu1 %v2687_v56, %s2489_s27 }
 0x51e   :  { %2348 = vrot.lane.b32.xlu0 %v2683_v55, %s2489_s27 }
 0x584   :  { %v494_v58 = vpop.xlane.xlu0 %493 }
 0x585   :  { %v491_v57 = vpop.xlane.xlu1 %490 }
 0x586   :  { %2427 = vrcp.f32 %v491_v57 }
 0x587   :  { %2429 = vrcp.f32 %v494_v58 }
 0x589   :  { %v497_v61 = vpop.xlane.xlu1 %496 }
 0x58a   :  { %2431 = vrcp.f32 %v497_v61 }
 0x58d   :  { %v500_v63 = vpop.xlane.xlu0 %499 }
 0x58e   :  { %v503_v60 = vpop.xlane.xlu1 %502  ;;  %2433 = vrcp.f32 %v500_v63 }
 0x58f   :  { %2435 = vrcp.f32 %v503_v60 }
 0x590   :  { %v2428_v3 = vpop.eup %2427 }
 0x591   :  { %v521_v0 = vmul.f32 %v2428_v3, %v2414_v33  ;;  %v506_v5 = vpop.xlane.xlu0 %505  ;;  %v2430_v17 = vpop.eup %2429 }
 0x592   :  { %v509_v1 = vpop.xlane.xlu1 %508  ;;  %2437 = vrcp.f32 %v506_v5  ;;  %v522_v20 = vmul.f32 %v2430_v17, %v2668_v32 }
 0x593   :  { %2046 = vmatprep.mubr.msk.f32.mxu0 %vm440_vm3, %v521_v0  ;;  %2439 = vrcp.f32 %v509_v1 }
 0x594   :  { %v2432_v18 = vpop.eup %2431 }
 0x595   :  { %v512_v12 = vpop.xlane.xlu0 %511  ;;  %v523_v23 = vmul.f32 %v2432_v18, %v2416_v40 }
 0x596   :  { %v2344_v2 = vpop.permute.xlu1 %2343  ;;  %2441 = vrcp.f32 %v512_v12 }
 0x597   :  { %v2346_v4 = vunpack.i.h.bf16 %v2344_v2  ;;  %v2345_v8 = vunpack.i.l.bf16 %v2344_v2 }
 0x598   :  { %v2434_v21 = vpop.eup %2433 }
 0x599   :  { %v2238_v15 = vpack.c.bf16 %v2346_v4, %v2345_v8  ;;  %v2436_v24 = vpop.eup %2435  ;;  %v524_v25 = vmul.f32 %v2434_v21, %v2418_v43  ;;  %v2349_v33 = vpop.permute.xlu0 %2348 }
 0x59a   :  { %v525_v27 = vmul.f32 %v2436_v24, %v2420_v44  ;;  %v2351_v34 = vunpack.i.h.bf16 %v2349_v33  ;;  %v2350_v35 = vunpack.i.l.bf16 %v2349_v33  ;;  %v2354_v37 = vpop.permute.xlu1 %2353  ;;  %v1121_v33 = vld [vmem:[%s2935_s1 + $0xa8] sm:$0xff] }
 0x59b   :  { %2239 = vmatprep.subr.bf16.mxu0 %v2238_v15  ;;  %v2356_v38 = vunpack.i.h.bf16 %v2354_v37  ;;  %v2355_v39 = vunpack.i.l.bf16 %v2354_v37  ;;  %v2753_v37 = vpack.i.bf16 %v2543_v7, %v2538_v6 }
 0x59c   :  { %2241 = vmatpush3.bf16.msra.mxu0 %v2238_v15  ;;  %v2438_v26 = vpop.eup %2437  ;;  %v2242_v36 = vpack.c.bf16 %v2351_v34, %v2350_v35 }
 0x59d   :  { %v2440_v28 = vpop.eup %2439  ;;  %v526_v29 = vmul.f32 %v2438_v26, %v2422_v47  ;;  %v2246_v40 = vpack.c.bf16 %v2356_v38, %v2355_v39  ;;  %v1852_v26 = vld [vmem:[%s2935_s1 + $0xa1] ss:$0 sm:$0xff]  ;;  %v2762_v38 = vpack.i.bf16 %v2566_v14, %v2561_v13 }
 0x59e   :  { %v527_v31 = vmul.f32 %v2440_v28, %v2424_v48  ;;  %2243 = vmatprep.subr.bf16.mxu1 %v2242_v36  ;;  %v827_v28 = vld [vmem:[%s2935_s1 + $0x90] sm:$0xff] }
 0x59f   :  { %2047 = vmatmul.mubr.msk.f32.vlgmr.msra.gmra.mrb[2].mxu0 %vm440_vm3, %v522_v20  ;;  %2245 = vmatpush3.bf16.msra.mxu1 %v2242_v36  ;;  %v1122_v36 = vld [vmem:[%s2935_s1 + $0xb0] sm:$0xff] }
 0x5a0   :  { %2049 = vmatprep.mubr.msk.f32.mxu0 %vm440_vm3, %v523_v23  ;;  %v2442_v30 = vpop.eup %2441  ;;  %2247 = vmatprep.subr.bf16.mxu1 %v2246_v40 }
 0x5a1   :  { %v528_v32 = vmul.f32 %v2442_v30, %v2426_v52 }
 0x5a3   :  { %2050 = vmatmul.mubr.msk.f32.gmra.mrb[4].mxu0 %vm440_vm3, %v524_v25  ;;  %2249 = vmatpush3.bf16.msra.mxu1 %v2246_v40  ;;  %v826_v25 = vld [vmem:[%s2935_s1 + $0x88] sm:$0xff] }
 0x5a4   :  { %2052 = vmatprep.mubr.msk.f32.mxu0 %vm440_vm3, %v525_v27 }
 0x5a7   :  { %2053 = vmatmul.mubr.msk.f32.gmra.mrb[6].mxu0 %vm440_vm3, %v526_v29  ;;  %v828_v29 = vld [vmem:[%s2935_s1 + $0x98] sm:$0xff] }
 0x5a8   :  { %2055 = vmatprep.mubr.msk.f32.mxu0 %vm440_vm3, %v527_v31  ;;  %v2254_v30 = vpack.c.bf16 %v828_v29, %v827_v28  ;;  %v2362_v35 = vpack.i.bf16 %v828_v29, %v827_v28  ;;  %v1109_v28 = vld [vmem:[%s2934_s0 + $0x70] sm:$0xff]  ;;  %v1110_v29 = vld [vmem:[%s2934_s0 + $0x78] sm:$0xff] }
 0x5ab   :  { %2056 = vmatmul.mubr.msk.f32.gmra.mrb[8].mxu0 %vm440_vm3, %v528_v32  ;;  %v1120_v32 = vld [vmem:[%s2935_s1 + $0xa0] sm:$0xff] }
 0x5ac   :  { %v2367_v34 = vpack.i.bf16 %v1121_v33, %v1120_v32  ;;  %v1113_v32 = vld [vmem:[%s2934_s0 + $0x90] sm:$0xff]  ;;  %v1114_v33 = vld [vmem:[%s2934_s0 + $0x98] sm:$0xff] }
 0x672   :  { %v2048_v41 = vpop.f32.mrb[2].mxu0 }
 0x673   :  { %v625_v42 = vpop.f32.mrb[3].mxu0  ;;  %v665_v44 = vmul.f32 %v2048_v41, %v2624_v62 }
 0x674   :  { %v664_v47 = vmul.f32 %v625_v42, %v2606_v59 }
 0x676   :  { %v2051_v43 = vpop.f32.mrb[4].mxu0 }
 0x677   :  { %v667_v45 = vmul.f32 %v2051_v43, %v2628_v9  ;;  %v635_v46 = vpop.f32.mrb[5].mxu0 }
 0x678   :  { %v666_v48 = vmul.f32 %v635_v46, %v2632_v11  ;;  %v1849_v11 = vld [vmem:[%s2935_s1 + $0xa4] ss:$0 sm:$0xff] }
 0x679   :  { %v673_v49 = vadd.f32 %v667_v45, %v665_v44 }
 0x67a   :  { %v672_v50 = vadd.f32 %v666_v48, %v664_v47  ;;  %v2054_v52 = vpop.f32.mrb[6].mxu0 }
 0x67b   :  { %v669_v54 = vmul.f32 %v2054_v52, %v2636_v16  ;;  %v645_v57 = vpop.f32.mrb[7].mxu0 }
 0x67c   :  { %v668_v58 = vmul.f32 %v645_v57, %v2630_v10 }
 0x67d   :  { %v675_v61 = vadd.f32 %v673_v49, %v669_v54 }
 0x67e   :  { %v674_v63 = vadd.f32 %v672_v50, %v668_v58  ;;  %v2057_v60 = vpop.f32.mrb[8].mxu0 }
 0x67f   :  { %v671_v62 = vmul.f32 %v2057_v60, %v2648_v22  ;;  %v655_v3 = vpop.f32.mrb[9].mxu0 }
 0x680   :  { %v670_v9 = vmul.f32 %v655_v3, %v2642_v19 }
 0x681   :  { %v677_v0 = vadd.f32 %v675_v61, %v671_v62 }
 0x682   :  { %v676_v59 = vadd.f32 %v674_v63, %v670_v9 }
 0x684   :  { %2066 = vmatprep.mubr.msk.f32.mxu1 %vm115_vm1, %v676_v59 }
 0x685   :  { %2067 = vmatmul.mubr.msk.f32.vlgmr.msra.gmra.mrb[10].mxu1 %vm115_vm1, %v677_v0 }
 0x758   :  { %v2068_v16 = vpop.f32.mrb[10].mxu1 }
 0x759   :  { %v781_v10 = vadd.f32 %v2068_v16, %v1849_v11  ;;  %v775_v1 = vpop.f32.mrb[11].mxu1 }
 0x75a   :  { %v776_v5 = vadd.f32 %v1849_v11, %v775_v1 }
 0x75b   :  { %v785_v2 = vadd.f32 %v781_v10, %v2599_v53 }
 0x75c   :  { %v784_v22 = vadd.f32 %v776_v5, %v2595_v51  ;;  %v825_v51 = vld [vmem:[%s2935_s1 + $0x80] sm:$0xff] }
 0x75d   :  { %v790_v19 = vsel %vm115_vm1, %v785_v2, 0.0  ;;  %v2250_v27 = vpack.c.bf16 %v826_v25, %v825_v51  ;;  %v2357_v31 = vpack.i.bf16 %v826_v25, %v825_v51  ;;  %v1105_v51 = vld [vmem:[%s2934_s0 + $0x50] sm:$0xff]  ;;  %v1106_v25 = vld [vmem:[%s2934_s0 + $0x58] sm:$0xff] }
 0x75e   :  { %791 = vadd.xlane.f32.xlu0 %v790_v19  ;;  %v787_v4 = vsel %vm115_vm1, %v784_v22, 0.0 }
 0x75f   :  { %788 = vadd.xlane.f32.xlu1 %v787_v4  ;;  %2251 = vmatprep.subr.bf16.mxu0 %v2250_v27 }
 0x760   :  { %2253 = vmatpush3.bf16.msra.mxu0 %v2250_v27  ;;  %v1108_v27 = vld [vmem:[%s2934_s0 + $0x68] sm:$0xff] }
 0x761   :  { %2255 = vmatprep.subr.bf16.mxu0 %v2254_v30 }
 0x764   :  { %2257 = vmatpush3.bf16.msra.mxu0 %v2254_v30  ;;  %v1111_v30 = vld [vmem:[%s2934_s0 + $0x80] sm:$0xff] }
 0x7eb   :  { %v792_v8 = vpop.xlane.xlu0 %791 }
 0x7ec   :  { %v794_v12 = vmul.f32 0.03125, %v792_v8  ;;  %v789_v15 = vpop.xlane.xlu1 %788 }
 0x7ed   :  { %v793_v17 = vmul.f32 0.03125, %v789_v15 }
 0x7ee   :  { %v796_v18 = vsub.f32 %v785_v2, %v794_v12 }
 0x7ef   :  { %v795_v20 = vsub.f32 %v784_v22, %v793_v17 }
 0x7f0   :  { %v798_v21 = vmul.f32 %v796_v18, %v796_v18 }
 0x7f1   :  { %v797_v23 = vmul.f32 %v795_v20, %v795_v20 }
 0x7f2   :  { %v802_v24 = vsel %vm115_vm1, %v798_v21, 0.0  ;;  %v1101_v21 = vld [vmem:[%s2934_s0 + $0x30] sm:$0xff] }
 0x7f3   :  { %803 = vadd.xlane.f32.xlu1 %v802_v24  ;;  %v799_v53 = vsel %vm115_vm1, %v797_v23, 0.0  ;;  %v1102_v23 = vld [vmem:[%s2934_s0 + $0x38] sm:$0xff]  ;;  %v1103_v24 = vld [vmem:[%s2934_s0 + $0x40] sm:$0xff] }
 0x7f4   :  { %800 = vadd.xlane.f32.xlu0 %v799_v53  ;;  %v1104_v53 = vld [vmem:[%s2934_s0 + $0x48] sm:$0xff] }
 0x804   :  { %2358 = vrot.lane.b32.xlu1 %v2357_v31, %s2491_s19  ;;  %v1112_v31 = vld [vmem:[%s2934_s0 + $0x88] sm:$0xff] }
 0x808   :  { %2363 = vrot.lane.b32.xlu1 %v2362_v35, %s2491_s19  ;;  %v1853_v35 = vld [vmem:[%s2935_s1 + $0xa6] ss:$0 sm:$0xff] }
 0x80a   :  { %820 = vrot.lane.b32.xlu0 %v1852_v26, %s2490_s8 }
 0x80c   :  { %1142 = vrot.lane.b32.xlu1 %v1122_v36, %s2491_s19 }
 0x80e   :  { %2368 = vrot.lane.b32.xlu0 %v2367_v34, %s2491_s19  ;;  %v1115_v34 = vld [vmem:[%s2934_s0 + $0xa0] sm:$0xff] }
 0x810   :  { %2378 = vrot.lane.b32.xlu1 %v2687_v56, %s2491_s19 }
 0x812   :  { %2373 = vrot.lane.b32.xlu0 %v2683_v55, %s2491_s19 }
 0x814   :  { %2388 = vrot.lane.b32.xlu1 %v2762_v38, %s2491_s19 }
 0x816   :  { %2383 = vrot.lane.b32.xlu0 %v2753_v37, %s2491_s19 }
 0x81a   :  { %974 = vrot.lane.b32.xlu0 %v1849_v11, %s2490_s8 }
 0x880   :  { %v804_v55 = vpop.xlane.xlu1 %803 }
 0x881   :  { %v806_v6 = vmul.f32 0.03125, %v804_v55  ;;  %v801_v7 = vpop.xlane.xlu0 %800 }
 0x882   :  { %v805_v39 = vmul.f32 0.03125, %v801_v7 }
 0x883   :  { %v808_v40 = vadd.f32 1e-05, %v806_v6 }
 0x884   :  { %v807_v41 = vadd.f32 1e-05, %v805_v39  ;;  %v2359_v42 = vpop.permute.xlu1 %2358 }
 0x885   :  { %2443 = vrsqrt.f32 %v808_v40  ;;  %v2361_v43 = vunpack.i.h.bf16 %v2359_v42  ;;  %v2360_v56 = vunpack.i.l.bf16 %v2359_v42  ;;  %v821_v48 = vpop.permute.xlu0 %820 }
 0x886   :  { %2445 = vrsqrt.f32 %v807_v41 }
 0x887   :  { %v2274_v45 = vpack.c.bf16 %v2361_v43, %v2360_v56 }
 0x888   :  { %v2364_v46 = vpop.permute.xlu1 %2363 }
 0x889   :  { %2275 = vmatprep.subr.bf16.mxu0 %v2274_v45  ;;  %v2366_v50 = vunpack.i.h.bf16 %v2364_v46  ;;  %v2365_v52 = vunpack.i.l.bf16 %v2364_v46  ;;  %v2369_v63 = vpop.permute.xlu0 %2368 }
 0x88a   :  { %v2371_v60 = vunpack.i.h.bf16 %v2369_v63  ;;  %v2370_v62 = vunpack.i.l.bf16 %v2369_v63 }
 0x88b   :  { %v2278_v61 = vpack.c.bf16 %v2366_v50, %v2365_v52 }
 0x88c   :  { %v2282_v3 = vpack.c.bf16 %v2371_v60, %v2370_v62  ;;  %v1143_v0 = vpop.permute.xlu1 %1142 }
 0x88d   :  { %v2374_v9 = vpop.permute.xlu0 %2373 }
 0x88e   :  { %v2376_v59 = vunpack.i.h.bf16 %v2374_v9  ;;  %v2375_v11 = vunpack.i.l.bf16 %v2374_v9  ;;  %v2494_v9 = vmov 0.0  }
 0x88f   :  { %v2444_v44 = vpop.eup %2443 }
 0x890   :  { %v2446_v13 = vpop.eup %2445  ;;  %v812_v14 = vmul.f32 %v2444_v44, %v796_v18  ;;  %v2258_v16 = vpack.c.bf16 %v2376_v59, %v2375_v11  ;;  %v2379_v10 = vpop.permute.xlu1 %2378 }
 0x891   :  { %v811_v47 = vmul.f32 %v2446_v13, %v795_v20  ;;  %v2381_v1 = vunpack.i.h.bf16 %v2379_v10  ;;  %v2380_v5 = vunpack.i.l.bf16 %v2379_v10  ;;  %v2384_v22 = vpop.permute.xlu0 %2383  ;;  %v1100_v20 = vld [vmem:[%s2934_s0 + $0x28] sm:$0xff] }
 0x892   :  { %v818_v49 = vmul.f32 %v1852_v26, %v812_v14  ;;  %2259 = vmatprep.subr.bf16.mxu1 %v2258_v16  ;;  %v2386_v19 = vunpack.i.h.bf16 %v2384_v22  ;;  %v2385_v4 = vunpack.i.l.bf16 %v2384_v22 }
 0x893   :  { %v817_v54 = vmul.f32 %v1852_v26, %v811_v47  ;;  %2261 = vmatpush3.bf16.msra.mxu1 %v2258_v16  ;;  %v2262_v2 = vpack.c.bf16 %v2381_v1, %v2380_v5  ;;  %v1107_v26 = vld [vmem:[%s2934_s0 + $0x60] sm:$0xff] }
 0x894   :  { %v2769_v58 = vadd.f32 %v821_v48, %v818_v49  ;;  %v2266_v8 = vpack.c.bf16 %v2386_v19, %v2385_v4  ;;  %v2389_v12 = vpop.permute.xlu1 %2388 }
 0x895   :  { %v2767_v57 = vadd.f32 %v821_v48, %v817_v54  ;;  %2263 = vmatprep.subr.bf16.mxu1 %v2262_v2  ;;  %v2391_v15 = vunpack.i.h.bf16 %v2389_v12  ;;  %v2390_v17 = vunpack.i.l.bf16 %v2389_v12 }
 0x897   :  { %2077 = vmatprep.mubr.msk.f32.mxu0 %vm115_vm1, %v2767_v57  ;;  %2265 = vmatpush3.bf16.msra.mxu1 %v2262_v2  ;;  %v2270_v18 = vpack.c.bf16 %v2391_v15, %v2390_v17 }
 0x898   :  { %2078 = vmatmul.mubr.msk.f32.vlgmr.msra.gmra.mrb[10].mxu0 %vm115_vm1, %v2769_v58  ;;  %2267 = vmatprep.subr.bf16.mxu1 %v2266_v8 }
 0x899   :  { %2277 = vmatpush3.bf16.msra.mxu0 %v2274_v45  ;;  %2113 = vmatprep.mubr.msk.f32.mxu0 %vm1151_vm4, %v1100_v20 }
 0x89a   :  { %2279 = vmatprep.subr.bf16.mxu0 %v2278_v61 }
 0x89b   :  { %2269 = vmatpush3.bf16.msra.mxu1 %v2266_v8 }
 0x89c   :  { %2271 = vmatprep.subr.bf16.mxu1 %v2270_v18 }
 0x89d   :  { %2281 = vmatpush3.bf16.msra.mxu0 %v2278_v61 }
 0x89e   :  { %2283 = vmatprep.subr.bf16.mxu0 %v2282_v3 }
 0x89f   :  { %2273 = vmatpush3.bf16.msra.mxu1 %v2270_v18 }
 0x8a1   :  { %2285 = vmatpush3.bf16.msra.mxu0 %v2282_v3  ;;  %v2492_v3 = vmov 0.0|0.0  }
 0x8a2   :  { %2111 = vmatprep.subr.mxu0 %v1143_v0  ;;  %2286 = vmatprep.subr.bf16.mxu1 %v2492_v3 }
 0x8a5   :  { %2112 = vmatpush3.msra.mxu0 %v1143_v0 }
 0x8a6   :  { %2114 = vmatmul.mubr.msk.f32.vlgmr.msra.gmra.mrb[12].mxu0 %vm1151_vm4, %v1101_v21  ;;  %2313 = vmatprep.subr.bf16.mxu0 %v2492_v3 }
 0x8a7   :  { %2116 = vmatprep.mubr.msk.f32.mxu0 %vm1151_vm4, %v1102_v23 }
 0x8aa   :  { %2117 = vmatmul.mubr.msk.f32.gmra.mrb[14].mxu0 %vm1151_vm4, %v1103_v24 }
 0x8ab   :  { %2119 = vmatprep.mubr.msk.f32.mxu0 %vm1151_vm4, %v1104_v53 }
 0x8ae   :  { %2120 = vmatmul.mubr.msk.f32.gmra.mrb[16].mxu0 %vm1151_vm4, %v1105_v51 }
 0x8af   :  { %2122 = vmatprep.mubr.msk.f32.mxu0 %vm1151_vm4, %v1106_v25 }
 0x8b2   :  { %2123 = vmatmul.mubr.msk.f32.gmra.mrb[18].mxu0 %vm1151_vm4, %v1107_v26 }
 0x8b3   :  { %2125 = vmatprep.mubr.msk.f32.mxu0 %vm1151_vm4, %v1108_v27 }
 0x8b6   :  { %2126 = vmatmul.mubr.msk.f32.gmra.mrb[20].mxu0 %vm1151_vm4, %v1109_v28 }
 0x8b7   :  { %2128 = vmatprep.mubr.msk.f32.mxu0 %vm1151_vm4, %v1110_v29 }
 0x8ba   :  { %2129 = vmatmul.mubr.msk.f32.gmra.mrb[22].mxu0 %vm1151_vm4, %v1111_v30 }
 0x8bb   :  { %2131 = vmatprep.mubr.msk.f32.mxu0 %vm1151_vm4, %v1112_v31 }
 0x8be   :  { %2132 = vmatmul.mubr.msk.f32.gmra.mrb[24].mxu0 %vm1151_vm4, %v1113_v32 }
 0x8bf   :  { %2134 = vmatprep.mubr.msk.f32.mxu0 %vm1151_vm4, %v1114_v33 }
 0x8c2   :  { %2135 = vmatmul.mubr.msk.f32.gmra.mrb[26].mxu0 %vm1151_vm4, %v1115_v34 }
 0x8c3   :  { %2183 = vmatprep.mubr.msk.f32.mxu0 %vm2493_vm5, %v2494_v9 }
 0x96b   :  { %v2079_v36 = vpop.f32.mrb[10].mxu0 }
 0x96c   :  { %v912_v55 = vadd.f32 %v2079_v36, %v1853_v35  ;;  %v906_v6 = vpop.f32.mrb[11].mxu0 }
 0x96d   :  { %v907_v7 = vadd.f32 %v1853_v35, %v906_v6 }
 0x96e   :  { %v916_v39 = vmul.f32 %v912_v55, %v912_v55 }
 0x96f   :  { %v915_v40 = vmul.f32 %v907_v7, %v907_v7 }
 0x970   :  { %v918_v41 = vmul.f32 %v916_v39, %v912_v55  ;;  %v1361_v39 = vld [vmem:[%s2935_s1 + $0xb8] sm:$0x3] }
 0x971   :  { %v917_v42 = vmul.f32 %v915_v40, %v907_v7  ;;  %v975_v40 = vpop.permute.xlu0 %974 }
 0x972   :  { %v920_v43 = vmul.f32 0.044715, %v918_v41 }
 0x973   :  { %v919_v56 = vmul.f32 0.044715, %v917_v42 }
 0x974   :  { %v922_v44 = vadd.f32 %v920_v43, %v912_v55 }
 0x975   :  { %v921_v45 = vadd.f32 %v919_v56, %v907_v7 }
 0x976   :  { %v924_v13 = vmul.f32 0.7978846, %v922_v44 }
 0x977   :  { %v923_v14 = vmul.f32 0.7978846, %v921_v45 }
 0x978   :  { %2447 = vtanh.f32 %v924_v13 }
 0x979   :  { %2449 = vtanh.f32 %v923_v14  ;;  %v2115_v63 = vpop.f32.mrb[12].mxu0 }
 0x97a   :  { %v1346_v60 = vmax.f32 %v2115_v63, 0.0  ;;  %v1266_v62 = vpop.f32.mrb[13].mxu0 }
 0x97b   :  { %v1345_v0 = vmax.f32 %v1266_v62, 0.0 }
 0x97d   :  { %v2118_v59 = vpop.f32.mrb[14].mxu0  ;;  %v2287_v10 = vpack.c.bf16 %v1346_v60, %v1345_v0  ;;  %v2464_v60 = vld [vmem:[%s2935_s1 + $0x48] sm:$0xff]  ;;  %v1858_v0 = vld [vmem:[%s2935_s1 + $0xa2] ss:$0 sm:$0xff] }
 0x97e   :  { %v1348_v11 = vmax.f32 %v2118_v59, 0.0  ;;  %v1276_v16 = vpop.f32.mrb[15].mxu0 }
 0x97f   :  { %v1347_v1 = vmax.f32 %v1276_v16, 0.0  ;;  %v1875_v16 = vld [vmem:[%s2935_s1 + $0xa5] ss:$0 sm:$0xff] }
 0x981   :  { %v2121_v5 = vpop.f32.mrb[16].mxu0  ;;  %v2290_v19 = vpack.c.bf16 %v1348_v11, %v1347_v1 }
 0x982   :  { %v2448_v46 = vpop.eup %2447  ;;  %v1350_v2 = vmax.f32 %v2121_v5, 0.0  ;;  %v1286_v22 = vpop.f32.mrb[17].mxu0 }
 0x983   :  { %v2450_v47 = vpop.eup %2449  ;;  %v928_v48 = vadd.f32 1.0, %v2448_v46  ;;  %v1349_v4 = vmax.f32 %v1286_v22, 0.0 }
 0x984   :  { %v927_v49 = vadd.f32 1.0, %v2450_v47 }
 0x985   :  { %v930_v50 = vmul.f32 0.5, %v928_v48  ;;  %v2124_v8 = vpop.f32.mrb[18].mxu0  ;;  %v2293_v12 = vpack.c.bf16 %v1350_v2, %v1349_v4 }
 0x986   :  { %v929_v52 = vmul.f32 0.5, %v927_v49  ;;  %v1352_v15 = vmax.f32 %v2124_v8, 0.0  ;;  %v1296_v17 = vpop.f32.mrb[19].mxu0 }
 0x987   :  { %v932_v61 = vmul.f32 %v930_v50, %v912_v55  ;;  %v1351_v18 = vmax.f32 %v1296_v17, 0.0 }
 0x988   :  { %v931_v54 = vmul.f32 %v929_v52, %v907_v7 }
 0x989   :  { %v2296_v20 = vpack.c.bf16 %v1352_v15, %v1351_v18  ;;  %v2127_v21 = vpop.f32.mrb[20].mxu0 }
 0x98a   :  { %2096 = vmatprep.mubr.msk.f32.mxu1 %vm32_vm0, %v931_v54  ;;  %v1354_v23 = vmax.f32 %v2127_v21, 0.0  ;;  %v1306_v24 = vpop.f32.mrb[21].mxu0 }
 0x98b   :  { %2097 = vmatmul.mubr.msk.f32.vlgmr.msra.gmra.mrb[12].mxu1 %vm32_vm0, %v932_v61  ;;  %v1353_v53 = vmax.f32 %v1306_v24, 0.0 }
 0x98c   :  { %2169 = vmatprep.mubr.msk.f32.mxu1 %vm2493_vm5, %v2494_v9  ;;  %2288 = vmatpush3.bf16.msra.mxu1 %v2287_v10 }
 0x98d   :  { %2289 = vmatprep.subr.bf16.mxu1 %v2492_v3  ;;  %v2299_v51 = vpack.c.bf16 %v1354_v23, %v1353_v53  ;;  %v2130_v25 = vpop.f32.mrb[22].mxu0 }
 0x98e   :  { %v1356_v26 = vmax.f32 %v2130_v25, 0.0  ;;  %v1316_v27 = vpop.f32.mrb[23].mxu0 }
 0x98f   :  { %v1355_v28 = vmax.f32 %v1316_v27, 0.0 }
 0x990   :  { %2291 = vmatpush3.bf16.msra.mxu1 %v2290_v19 }
 0x991   :  { %2292 = vmatprep.subr.bf16.mxu1 %v2492_v3  ;;  %v2302_v29 = vpack.c.bf16 %v1356_v26, %v1355_v28  ;;  %v2133_v30 = vpop.f32.mrb[24].mxu0 }
 0x992   :  { %v1358_v31 = vmax.f32 %v2133_v30, 0.0  ;;  %v1326_v32 = vpop.f32.mrb[25].mxu0 }
 0x993   :  { %v1357_v33 = vmax.f32 %v1326_v32, 0.0 }
 0x994   :  { %2294 = vmatpush3.bf16.msra.mxu1 %v2293_v12 }
 0x995   :  { %2295 = vmatprep.subr.bf16.mxu1 %v2492_v3  ;;  %v2305_v34 = vpack.c.bf16 %v1358_v31, %v1357_v33  ;;  %v2136_v35 = vpop.f32.mrb[26].mxu0  ;;  %v1099_v33 = vld [vmem:[%s2934_s0 + $0x20] sm:$0x3] }
 0x996   :  { %v1360_v36 = vmax.f32 %v2136_v35, 0.0  ;;  %v1336_v55 = vpop.f32.mrb[27].mxu0 }
 0x997   :  { %v1359_v6 = vmax.f32 %v1336_v55, 0.0 }
 0x998   :  { %2297 = vmatpush3.bf16.msra.mxu1 %v2296_v20 }
 0x999   :  { %2298 = vmatprep.subr.bf16.mxu1 %v2492_v3  ;;  %v2308_v7 = vpack.c.bf16 %v1360_v36, %v1359_v6 }
 0x99c   :  { %2300 = vmatpush3.bf16.msra.mxu1 %v2299_v51 }
 0x99d   :  { %2301 = vmatprep.subr.bf16.mxu1 %v2492_v3 }
 0x9a0   :  { %2303 = vmatpush3.bf16.msra.mxu1 %v2302_v29 }
 0x9a1   :  { %2304 = vmatprep.subr.bf16.mxu1 %v2492_v3 }
 0x9a4   :  { %2306 = vmatpush3.bf16.msra.mxu1 %v2305_v34 }
 0x9a5   :  { %2307 = vmatprep.subr.bf16.mxu1 %v2492_v3 }
 0x9a8   :  { %2309 = vmatpush3.bf16.msra.mxu1 %v2308_v7 }
 0x9a9   :  { %2310 = vmatprep.subr.bf16.mxu1 %v2492_v3 }
 0x9ab   :  { %2170 = vmatmul.mubr.f32.vlgmr.msra.gmra.mrb[14].mxu1 %v1361_v39 }
 0x9ac   :  { %2176 = vmatprep.mubr.msk.f32.mxu1 %vm2493_vm5, %v2494_v9 }
 0xa5e   :  { %v2098_v41 = vpop.f32.mrb[12].mxu1 }
 0xa5f   :  { %v1055_v42 = vadd.f32 %v2098_v41, %v975_v40  ;;  %v1049_v43 = vpop.f32.mrb[13].mxu1 }
 0xa60   :  { %v1050_v56 = vadd.f32 %v1049_v43, %v975_v40 }
 0xa61   :  { %v1059_v44 = vadd.f32 %v1055_v42, %v2769_v58 }
 0xa62   :  { %v1058_v45 = vadd.f32 %v1050_v56, %v2767_v57  ;;  %v2463_v57 = vld [vmem:[%s2935_s1 + $0x40] sm:$0xff] }
 0xa63   :  { %v1064_v13 = vsel %vm115_vm1, %v1059_v44, 0.0  ;;  %v2392_v62 = vpack.i.bf16 %v2464_v60, %v2463_v57  ;;  %v1717_v57 = vld [vmem:[%s2935_s1 + $0x68] sm:$0xff]  ;;  %v1718_v60 = vld [vmem:[%s2935_s1 + $0x70] sm:$0xff] }
 0xa64   :  { %1065 = vadd.xlane.f32.xlu0 %v1064_v13  ;;  %v1061_v14 = vsel %vm115_vm1, %v1058_v45, 0.0 }
 0xa65   :  { %1062 = vadd.xlane.f32.xlu1 %v1061_v14 }
 0xa7e   :  { %v1428_v59 = vpop.f32.mrb[14].mxu1 }
 0xa7f   :  { %v2171_v11 = vpop.f32.mrb[15].mxu1 }
 0xaf1   :  { %v1066_v46 = vpop.xlane.xlu0 %1065 }
 0xaf2   :  { %v1068_v47 = vmul.f32 0.03125, %v1066_v46  ;;  %v1063_v48 = vpop.xlane.xlu1 %1062 }
 0xaf3   :  { %v1067_v49 = vmul.f32 0.03125, %v1063_v48 }
 0xaf4   :  { %v1070_v50 = vsub.f32 %v1059_v44, %v1068_v47 }
 0xaf5   :  { %v1069_v52 = vsub.f32 %v1058_v45, %v1067_v49  ;;  %v1879_v49 = vld [vmem:[%s2935_s1 + $0xa3] ss:$0 sm:$0xff] }
 0xaf6   :  { %v1072_v54 = vmul.f32 %v1070_v50, %v1070_v50 }
 0xaf7   :  { %v1071_v61 = vmul.f32 %v1069_v52, %v1069_v52 }
 0xaf8   :  { %v1076_v63 = vsel %vm115_vm1, %v1072_v54, 0.0 }
 0xaf9   :  { %1077 = vadd.xlane.f32.xlu1 %v1076_v63  ;;  %v1073_v58 = vsel %vm115_vm1, %v1071_v61, 0.0 }
 0xafa   :  { %1074 = vadd.xlane.f32.xlu0 %v1073_v58  ;;  %v1716_v58 = vld [vmem:[%s2935_s1 + $0x60] sm:$0xff] }
 0xb0a   :  { %2393 = vrot.lane.b32.xlu1 %v2392_v62, %s2489_s27  ;;  %v2323_v62 = vpack.c.bf16 %v1717_v57, %v1716_v58 }
 0xb0e   :  { %2398 = vrot.lane.b32.xlu1 %v2753_v37, %s2489_s27 }
 0xb10   :  { %1094 = vrot.lane.b32.xlu0 %v1858_v0, %s2490_s8 }
 0xb12   :  { %1448 = vrot.lane.b32.xlu1 %v1875_v16, %s2490_s8 }
 0xb14   :  { %2403 = vrot.lane.b32.xlu0 %v2762_v38, %s2489_s27 }
 0xb86   :  { %v1078_v10 = vpop.xlane.xlu1 %1077 }
 0xb87   :  { %v1080_v1 = vmul.f32 0.03125, %v1078_v10  ;;  %v1075_v5 = vpop.xlane.xlu0 %1074 }
 0xb88   :  { %v1079_v2 = vmul.f32 0.03125, %v1075_v5 }
 0xb89   :  { %v1082_v22 = vadd.f32 1e-05, %v1080_v1 }
 0xb8a   :  { %v1081_v19 = vadd.f32 1e-05, %v1079_v2  ;;  %v2394_v37 = vpop.permute.xlu1 %2393 }
 0xb8b   :  { %2451 = vrsqrt.f32 %v1082_v22  ;;  %v2396_v4 = vunpack.i.h.bf16 %v2394_v37  ;;  %v2395_v8 = vunpack.i.l.bf16 %v2394_v37  ;;  %v1095_v12 = vpop.permute.xlu0 %1094  ;;  %v1880_v37 = vld [vmem:[%s2935_s1 + $0xbb] ss:$0 sm:$0xff] }
 0xb8c   :  { %2453 = vrsqrt.f32 %v1081_v19 }
 0xb8d   :  { %v2311_v38 = vpack.c.bf16 %v2396_v4, %v2395_v8 }
 0xb8e   :  { %v2399_v15 = vpop.permute.xlu1 %2398 }
 0xb8f   :  { %2312 = vmatpush3.bf16.msra.mxu1 %v2311_v38  ;;  %v2401_v17 = vunpack.i.h.bf16 %v2399_v15  ;;  %v2400_v18 = vunpack.i.l.bf16 %v2399_v15  ;;  %v2404_v20 = vpop.permute.xlu0 %2403 }
 0xb90   :  { %v2406_v21 = vunpack.i.h.bf16 %v2404_v20  ;;  %v2405_v23 = vunpack.i.l.bf16 %v2404_v20  ;;  %2316 = vmatprep.subr.bf16.mxu1 %v2492_v3 }
 0xb91   :  { %v2317_v24 = vpack.c.bf16 %v2401_v17, %v2400_v18 }
 0xb92   :  { %2177 = vmatmul.mubr.msk.f32.vlgmr.msra.gmra.mrb[16].mxu1 %vm440_vm3, %v1428_v59  ;;  %v2320_v53 = vpack.c.bf16 %v2406_v21, %v2405_v23  ;;  %v1449_v36 = vpop.permute.xlu1 %1448 }
 0xb93   :  { %2318 = vmatpush3.bf16.msra.mxu1 %v2317_v24  ;;  %2194 = vmatprep.mubr.msk.f32.mxu1 %vm2493_vm5, %v2494_v9 }
 0xb94   :  { %2319 = vmatprep.subr.bf16.mxu1 %v2492_v3 }
 0xb95   :  { %v2452_v51 = vpop.eup %2451 }
 0xb96   :  { %v2454_v25 = vpop.eup %2453  ;;  %v1086_v26 = vmul.f32 %v2452_v51, %v1070_v50 }
 0xb97   :  { %v1085_v27 = vmul.f32 %v2454_v25, %v1069_v52  ;;  %2321 = vmatpush3.bf16.msra.mxu1 %v2320_v53 }
 0xb98   :  { %v1092_v28 = vmul.f32 %v1858_v0, %v1086_v26 }
 0xb99   :  { %v1091_v29 = vmul.f32 %v1858_v0, %v1085_v27  ;;  %v1719_v0 = vld [vmem:[%s2935_s1 + $0x78] sm:$0xff]  ;;  %s2465_s1 = scalar_lea.vmem %s1818_s16, 32 }
 0xb9a   :  { %v1098_v30 = vadd.f32 %v1095_v12, %v1092_v28  ;;  %v2326_v59 = vpack.c.bf16 %v1719_v0, %v1718_v60  ;;  %p2466_p0 = scmp.ne.s32.totalorder %s1818_s16, %s2465_s1  ;;  %p2471_p2 = scmp.lt.s32.totalorder %s2465_s1, %s2465_s1 }
 0xb9b   :  { %v1097_v31 = vadd.f32 %v1095_v12, %v1091_v29 }
 0xb9c   :  { %p2472_p3 = por %p2471_p2, %p2470_p1 }
 0xb9d   :  { %v2314_v32 = vpack.c.bf16 %v1098_v30, %v1097_v31 }
 0xb9e   :  { %p2473_p4 = pnand %p2472_p3, %p2466_p0 }
 0xb9f   :  { %2315 = vmatpush3.bf16.msra.mxu0 %v2314_v32 }
 0xba0   :  { %2322 = vmatprep.subr.bf16.mxu0 %v2492_v3 }
 0xba2   :  { %2184 = vmatmul.mubr.msk.f32.vlgmr.msra.gmra.mrb[28].mxu0 %vm440_vm3, %v1099_v33 }
 0xba3   :  { %2205 = vmatprep.mubr.msk.f32.mxu0 %vm2493_vm5, %v2494_v9  ;;  %2324 = vmatpush3.bf16.msra.mxu0 %v2323_v62 }
 0xba4   :  { %2325 = vmatprep.subr.bf16.mxu0 %v2492_v3 }
 0xba7   :  { %2327 = vmatpush3.bf16.msra.mxu0 %v2326_v59 }
 0xc65   :  { %v1520_v34 = vpop.f32.mrb[16].mxu1 }
 0xc66   :  { %v2178_v35 = vpop.f32.mrb[17].mxu1  ;;  %v1521_v55 = vadd.f32 %v1520_v34, %v1449_v36 }
 0xc75   :  { %v1593_v6 = vpop.f32.mrb[28].mxu0 }
 0xc76   :  { %v1594_v7 = vadd.f32 %v1593_v6, %v1521_v55  ;;  %v2185_v39 = vpop.f32.mrb[29].mxu0 }
 0xc78   :  { %2195 = vmatmul.mubr.msk.f32.vlgmr.msra.gmra.mrb[18].mxu1 %vm115_vm1, %v1594_v7 }
 0xd4b   :  { %v1678_v40 = vpop.f32.mrb[18].mxu1 }
 0xd4c   :  { %v1679_v41 = vadd.f32 %v1875_v16, %v1678_v40  ;;  %v2196_v42 = vpop.f32.mrb[19].mxu1 }
 0xd4e   :  { %v1682_v43 = vmul.f32 %v1679_v41, %v1679_v41 }
 0xd50   :  { %v1683_v56 = vmul.f32 %v1682_v43, %v1679_v41 }
 0xd52   :  { %v1684_v44 = vmul.f32 0.044715, %v1683_v56 }
 0xd54   :  { %v1685_v45 = vadd.f32 %v1684_v44, %v1679_v41 }
 0xd56   :  { %v1686_v13 = vmul.f32 0.7978846, %v1685_v45 }
 0xd58   :  { %2455 = vtanh.f32 %v1686_v13 }
 0xd62   :  { %v2456_v14 = vpop.eup %2455 }
 0xd63   :  { %v1688_v9 = vadd.f32 1.0, %v2456_v14 }
 0xd65   :  { %v1689_v46 = vmul.f32 0.5, %v1688_v9 }
 0xd67   :  { %v1690_v47 = vmul.f32 %v1689_v46, %v1679_v41 }
 0xd69   :  { %v1693_v48 = vsel %vm1692_vm6, %v1690_v47, 0.0 }
 0xd6a   :  { %1694 = vadd.xlane.f32.xlu0 %v1693_v48 }
 0xd80   :  { %1712 = vrot.lane.b32.xlu0 %v1879_v49, %s2490_s8 }
 0xdf7   :  { %v1695_v50 = vpop.xlane.xlu0 %1694 }
 0xdf8   :  { %v1696_v52 = vmul.f32 0.03125, %v1695_v50 }
 0xdfa   :  { %v1697_v54 = vsub.f32 %v1690_v47, %v1696_v52 }
 0xdfb   :  { %v1713_v2 = vpop.permute.xlu0 %1712 }
 0xdfc   :  { %v1698_v61 = vmul.f32 %v1697_v54, %v1697_v54 }
 0xdfe   :  { %v1699_v63 = vsel %vm1692_vm6, %v1698_v61, 0.0 }
 0xdff   :  { %1700 = vadd.xlane.f32.xlu1 %v1699_v63 }
 0xe8c   :  { %v1701_v11 = vpop.xlane.xlu1 %1700 }
 0xe8d   :  { %v1702_v16 = vmul.f32 0.03125, %v1701_v11 }
 0xe8f   :  { %v1703_v10 = vadd.f32 1e-05, %v1702_v16 }
 0xe91   :  { %2457 = vrsqrt.f32 %v1703_v10 }
 0xe9b   :  { %v2458_v1 = vpop.eup %2457 }
 0xe9c   :  { %v1705_v5 = vmul.f32 %v2458_v1, %v1697_v54 }
 0xe9e   :  { %v1710_v22 = vmul.f32 %v1879_v49, %v1705_v5 }
 0xea0   :  { %v1715_v19 = vadd.f32 %v1713_v2, %v1710_v22 }
 0xea2   :  { %2206 = vmatmul.mubr.msk.f32.vlgmr.msra.gmra.mrb[30].mxu0 %vm115_vm1, %v1715_v19 }
 0xf75   :  { %v1794_v4 = vpop.f32.mrb[30].mxu0 }
 0xf76   :  { %v1795_v8 = vadd.f32 %v1880_v37, %v1794_v4  ;;  %v2207_v3 = vpop.f32.mrb[31].mxu0 }
 0xf78   :  { %v1799_v12 = vsel %vm1798_vm7, %v1795_v8, -inf }
 0xf79   :  { %1800 = vmax.xlane.f32.xlu1 %v1799_v12 }
0x1006   :  { %v1801_v38 = vpop.xlane.xlu1 %1800 }
0x1007   :  { %v1802_v15 = vsub.f32 %v1795_v8, %v1801_v38 }
0x1009   :  { %v1803_v17 = vmul.f32 1.442695, %v1802_v15 }
0x100b   :  { %2459 = vpow2.f32 %v1803_v17 }
0x1015   :  { %v2460_v18 = vpop.eup %2459 }
0x1016   :  { %v1805_v20 = vsel %vm1798_vm7, %v2460_v18, 0.0 }
0x1017   :  { %1806 = vadd.xlane.f32.xlu1 %v1805_v20 }
0x10a4   :  { %v1807_v21 = vpop.xlane.xlu1 %1806 }
0x10a5   :  { %2461 = vrcp.f32 %v1807_v21 }
0x10af   :  { %v2462_v23 = vpop.eup %2461 }
0x10b0   :  { %v1809_v24 = vmul.f32 %v2462_v23, %v2460_v18 }
0x10b2   :  { %1810 = vst [vmem:[#allocation2] sm:$0x3] %v1809_v24 }
0x10b3   :  { %2476 = shalt.err (!%p2473_p4)
}
0x10b4   :  { %s2477_s19 = scalar_lea.hbm %s2936_s2, 32 }
0x10b5   :  { %p2478_p5 = scmp.ne.s32.totalorder %s2936_s2, %s2477_s19  ;;  %p2481_p6 = scmp.lt.u32.totalorder %s2477_s19, %s2936_s2 }
0x10b7   :  { %p2483_p7 = pnand %p2481_p6, %p2478_p5 }
0x10b9   :  { %2486 = shalt.err (!%p2483_p7)
}
0x10ba   :  { %1820 = dma.vmem_to_hbm [thread:$0]  %s1818_s16, 32, %s2936_s2, [#allocation3]  }
0x10bb   :  { %2487 = dma.done.wait [#allocation3], 32  }
0x10bc   :  { %2488 = vsyncadd [#allocation3], 4294967264 }
0x10bd   :  { %1824 = vsyncpa [#allocation3], 1 }

</bundles_post_ra>
